<compile_context>
chip_gen: v6e
topology: v6e:2x2x1
jax: 0.10.0
libtpu: 0.0.40
codegen_flags: <defaults>
</compile_context>

<pallas_src>
import functools

import jax
import jax.numpy as jnp
from jax import lax
from jax.experimental import pallas as pl
from jax.experimental.pallas import tpu as pltpu

BN_EPS = 1e-5


def _round_up(n, k):
    return ((n + k - 1) // k) * k


# -----------------------------------------------------------------------------
# Static packing layout: every weight, the measure-group indicator matrices and
# every BN/PReLU parameter row share one (rows, LANE) f32 slab.
# -----------------------------------------------------------------------------
def _make_layout(cfg, B):
    m = cfg["measures"]
    input_size = cfg["samples"] * cfg["notes"]
    cs_pad = _round_up(cfg["class_size"], 8)
    l1, l2 = cfg["latent1_size"], cfg["latent2_size"]
    u1, u2 = cfg["units1"], cfg["units2"]
    mB = m * B

    weights = [
        ("enc1_w1x", input_size, u1),
        ("enc1_w1c", cs_pad, u1),
        ("enc1_w2", u1, l1),
        ("enc2_w1", m * l1, u2),
        ("enc2_w2", u2, l2),
        ("dec2_w1z", l2, u2),
        ("dec2_w1c", cs_pad, u2),
        ("dec2_w2", u2, u2),
        ("dec2_w3", u2, m * l1),
        ("dec1_w1", l1, u1),
        ("dec1_w2", u1, input_size),
        ("grp_scatter", mB, m),   # (m*B, m) one-hot: row r belongs to group r // B
        ("grp_gather", m, mB),    # its transpose
    ]

    rows = []
    for name, f in (("enc1_bn1", u1), ("enc1_bn2", l1), ("enc2_bn1", u2),
                    ("enc2_bn2", l2), ("dec2_bn1", u2), ("dec2_bn2", u2),
                    ("dec2_bn3", m * l1), ("dec1_bn1", u1)):
        rows += [(name + "_g", f), (name + "_b", f)]
    for name, f in (("enc1_prelu1", u1), ("enc1_prelu2", l1), ("enc2_prelu1", u2),
                    ("dec2_prelu1", u2), ("dec2_prelu2", u2),
                    ("dec2_prelu3", m * l1), ("dec1_prelu1", u1)):
        rows.append((name, f))

    lane = _round_up(max([n for _, _, n in weights] + [f for _, f in rows]), 128)

    wl, bl = {}, {}
    off = 0
    for name, k, n in weights:
        wl[name] = (off, k, n)
        off += _round_up(k, 8)
    for name, f in rows:
        bl[name] = (off, f)
        off += 1
    total_rows = _round_up(off, 8)
    return wl, bl, total_rows, lane


def _pack_params(p, cfg, B, layout):
    wl, bl, total_rows, lane = layout
    m = cfg["measures"]
    input_size = cfg["samples"] * cfg["notes"]
    cs = cfg["class_size"]
    cs_pad = _round_up(cs, 8)
    l2 = cfg["latent2_size"]
    f32 = jnp.float32

    def pad_c(w_t):  # pad the class-conditioning contraction dim to cs_pad
        return jnp.pad(w_t, ((0, cs_pad - cs), (0, 0)))

    w_enc1 = jnp.asarray(p["enc1_fc1_w"], f32)   # (u1, input_size + cs)
    w_dec2 = jnp.asarray(p["dec2_fc1_w"], f32)   # (u2, l2 + cs)
    mB = m * B
    grp = (jnp.arange(mB)[:, None] // B == jnp.arange(m)[None, :]).astype(f32)

    mats = {
        "enc1_w1x": w_enc1[:, :input_size].T,
        "enc1_w1c": pad_c(w_enc1[:, input_size:].T),
        "enc1_w2": jnp.asarray(p["enc1_fc2_w"], f32).T,
        "enc2_w1": jnp.asarray(p["enc2_fc1_w"], f32).T,
        "enc2_w2": jnp.asarray(p["enc2_fc2_w"], f32).T,
        "dec2_w1z": w_dec2[:, :l2].T,
        "dec2_w1c": pad_c(w_dec2[:, l2:].T),
        "dec2_w2": jnp.asarray(p["dec2_fc2_w"], f32).T,
        "dec2_w3": jnp.asarray(p["dec2_fc3_w"], f32).T,
        "dec1_w1": jnp.asarray(p["dec1_fc1_w"], f32).T,
        "dec1_w2": jnp.asarray(p["dec1_fc2_w"], f32).T,
        "grp_scatter": grp,
        "grp_gather": grp.T,
    }

    slab = jnp.zeros((total_rows, lane), f32)
    for name, (off, k, n) in wl.items():
        slab = slab.at[off:off + k, :n].set(mats[name])
    for name, (off, f) in bl.items():
        slab = slab.at[off:off + 1, :f].set(jnp.asarray(p[name], f32).reshape(1, f))
    return slab


# -----------------------------------------------------------------------------
# Single fused kernel: full CVAE forward.
#   x_ref : (m*B, input_size) measure-major rows (row = measure*B + batch)
#   c_ref : (B, cs_pad)
#   p_ref : (rows, LANE) packed parameter slab
#   o_ref : (m*B, input_size) x_hat slab
# -----------------------------------------------------------------------------
def _cvae_kernel(x_ref, c_ref, p_ref, o_ref, *, dims, wl, bl):
    m, B = dims["m"], dims["B"]
    l1 = dims["l1"]
    inv_b = 1.0 / float(B)

    def W(name):
        off, k, n = wl[name]
        return p_ref[off:off + k, :n]

    def V(name):
        off, f = bl[name]
        return p_ref[off:off + 1, :f]

    def dot(a, b):
        return jnp.dot(a, b, preferred_element_type=jnp.float32)

    def bn(y, gname, bname):
        # BatchNorm1d, training-mode batch stats over all rows (single-pass var).
        mu = jnp.mean(y, axis=0, keepdims=True)
        var = jnp.mean(y * y, axis=0, keepdims=True) - mu * mu
        return (y - mu) * lax.rsqrt(var + BN_EPS) * V(gname) + V(bname)

    G = W("grp_scatter")    # (m*B, m)
    Gt = W("grp_gather")    # (m, m*B)

    def bn_grouped(y, gname, bname):
        # Per-measure BatchNorm1d (training stats over the B rows of each
        # measure), expressed with tiny indicator matmuls so the (m*B, F) slab
        # stays 2-D and lane dense.
        mean = dot(Gt, y) * inv_b                     # (m, F)
        var = dot(Gt, y * y) * inv_b - mean * mean    # (m, F)
        scale = lax.rsqrt(var + BN_EPS)
        return (y - dot(G, mean)) * dot(G, scale) * V(gname) + V(bname)

    def prelu(y, aname):
        return jnp.where(y >= 0.0, y, V(aname) * y)

    x = x_ref[...]          # (m*B, input_size)
    c = c_ref[...]          # (B, cs_pad)

    # ---------------- encoder, level 1 (all measures fused) ----------------
    c1 = dot(c, W("enc1_w1c"))                               # (B, u1)
    c1_full = jnp.concatenate([c1] * m, axis=0)              # (m*B, u1)
    h = dot(x, W("enc1_w1x")) + c1_full                      # enc1_fc1
    h = prelu(bn_grouped(h, "enc1_bn1_g", "enc1_bn1_b"), "enc1_prelu1")
    h = dot(h, W("enc1_w2"))                                 # enc1_fc2 -> (m*B, l1)
    h = prelu(bn_grouped(h, "enc1_bn2_g", "enc1_bn2_b"), "enc1_prelu2")

    # torch.cat(enc1_outputs, 1): (m*B, l1) measure-major -> (B, m*l1)
    h_cat = jnp.concatenate(
        [h[mi * B:(mi + 1) * B, :] for mi in range(m)], axis=-1)

    # ---------------- encoder, level 2 ----------------
    h = dot(h_cat, W("enc2_w1"))                             # (B, u2), K = m*l1
    h = prelu(bn(h, "enc2_bn1_g", "enc2_bn1_b"), "enc2_prelu1")
    z = bn(dot(h, W("enc2_w2")), "enc2_bn2_g", "enc2_bn2_b")  # (B, l2), no PReLU

    # ---------------- decoder, level 2 ----------------
    h = dot(z, W("dec2_w1z")) + dot(c, W("dec2_w1c"))        # dec2_fc1
    h = prelu(bn(h, "dec2_bn1_g", "dec2_bn1_b"), "dec2_prelu1")
    # TODO(synk): F.dropout(p=0.1, training=True) applied as identity here.
    h = dot(h, W("dec2_w2"))
    h = prelu(bn(h, "dec2_bn2_g", "dec2_bn2_b"), "dec2_prelu2")
    d = dot(h, W("dec2_w3"))                                 # (B, m*l1) lane-dense
    d = prelu(bn(d, "dec2_bn3_g", "dec2_bn3_b"), "dec2_prelu3")

    # (B, m*l1) -> (m*B, l1) measure-major slab for the fused dec1 path.
    d_slab = jnp.concatenate(
        [d[:, mi * l1:(mi + 1) * l1] for mi in range(m)], axis=0)

    # ---------------- decoder, level 1 (all measures fused) ----------------
    h = dot(d_slab, W("dec1_w1"))                            # (m*B, u1)
    h = prelu(bn_grouped(h, "dec1_bn1_g", "dec1_bn1_b"), "dec1_prelu1")
    # TODO(synk): per-measure dropout also applied as identity.
    o_ref[...] = dot(h, W("dec1_w2"))                        # one dense (8,128) store


# -----------------------------------------------------------------------------
# Parameter initialization (deterministic, PyTorch-Linear-style uniform init).
# -----------------------------------------------------------------------------
def _linear_w(key, out_f, in_f):
    bound = 1.0 / jnp.sqrt(jnp.float32(in_f))
    return jax.random.uniform(key, (out_f, in_f), jnp.float32, -bound, bound)


def init_params(key, cfg):
    m = cfg["measures"]
    input_size = cfg["samples"] * cfg["notes"]
    cs = cfg["class_size"]
    l1, l2 = cfg["latent1_size"], cfg["latent2_size"]
    u1, u2 = cfg["units1"], cfg["units2"]
    prelu_init = 0.25

    names_shapes = [
        ("enc1_fc1_w", (u1, input_size + cs)),
        ("enc1_fc2_w", (l1, u1)),
        ("enc2_fc1_w", (u2, m * l1)),
        ("enc2_fc2_w", (l2, u2)),
        ("dec2_fc1_w", (u2, l2 + cs)),
        ("dec2_fc2_w", (u2, u2)),
        ("dec2_fc3_w", (m * l1, u2)),
        ("dec1_fc1_w", (u1, l1)),
        ("dec1_fc2_w", (input_size, u1)),
    ]
    keys = jax.random.split(key, len(names_shapes))
    p = {n: _linear_w(k, *s) for (n, s), k in zip(names_shapes, keys)}

    def bn(n_feat):
        return jnp.ones((n_feat,), jnp.float32), jnp.zeros((n_feat,), jnp.float32)

    p["enc1_bn1_g"], p["enc1_bn1_b"] = bn(u1)
    p["enc1_bn2_g"], p["enc1_bn2_b"] = bn(l1)
    p["enc2_bn1_g"], p["enc2_bn1_b"] = bn(u2)
    p["enc2_bn2_g"], p["enc2_bn2_b"] = bn(l2)
    p["dec2_bn1_g"], p["dec2_bn1_b"] = bn(u2)
    p["dec2_bn2_g"], p["dec2_bn2_b"] = bn(u2)
    p["dec2_bn3_g"], p["dec2_bn3_b"] = bn(m * l1)
    p["dec1_bn1_g"], p["dec1_bn1_b"] = bn(u1)

    p["enc1_prelu1"] = jnp.full((u1,), prelu_init, jnp.float32)
    p["enc1_prelu2"] = jnp.full((l1,), prelu_init, jnp.float32)
    p["enc2_prelu1"] = jnp.full((u2,), prelu_init, jnp.float32)
    p["enc2_prelu2"] = jnp.full((u2,), prelu_init, jnp.float32)  # unused in forward
    p["dec2_prelu1"] = jnp.full((u2,), prelu_init, jnp.float32)
    p["dec2_prelu2"] = jnp.full((u2,), prelu_init, jnp.float32)
    p["dec2_prelu3"] = jnp.full((m * l1,), prelu_init, jnp.float32)
    p["dec1_prelu1"] = jnp.full((u1,), prelu_init, jnp.float32)
    return p


# -----------------------------------------------------------------------------
# CVAE forward: one pallas_call for the whole model (3 inputs, 1 output).
# -----------------------------------------------------------------------------
def cvae_forward(p, x, c, cfg):
    m = cfg["measures"]
    samples, notes = cfg["samples"], cfg["notes"]
    input_size = samples * notes
    cs = cfg["class_size"]
    cs_pad = _round_up(cs, 8)
    B = x.shape[0]

    dims = dict(m=m, B=B, input_size=input_size,
                l1=cfg["latent1_size"], l2=cfg["latent2_size"],
                u1=cfg["units1"], u2=cfg["units2"])
    layout = _make_layout(cfg, B)
    wl, bl, _, _ = layout

    # (B, m, samples, notes) -> measure-major (m*B, input_size) slab so the
    # shared-weight matmuls run once over all m*B rows (full 8 sublanes).
    x_slab = (jnp.asarray(x, jnp.float32)
              .reshape(B, m, input_size)
              .transpose(1, 0, 2)
              .reshape(m * B, input_size))
    c_p = jnp.pad(jnp.asarray(c, jnp.float32), ((0, 0), (0, cs_pad - cs)))
    slab = _pack_params(p, cfg, B, layout)

    kernel = functools.partial(_cvae_kernel, dims=dims, wl=wl, bl=bl)
    vm = pl.BlockSpec(memory_space=pltpu.MemorySpace.VMEM)
    out = pl.pallas_call(
        kernel,
        out_shape=jax.ShapeDtypeStruct((m * B, input_size), jnp.float32),
        in_specs=[vm, vm, vm],
        out_specs=vm,
    )(x_slab, c_p, slab)

    x_hat = (out.reshape(m, B, input_size)
             .transpose(1, 0, 2)
             .reshape(B, m, samples, notes))
    return x_hat, 0, 0


if __name__ == "__main__":
    cfg = dict(measures=4, samples=8, notes=16,
               latent1_size=32, latent2_size=16,
               class_size=2, units1=64, units2=32)
    B = 2

    key = jax.random.PRNGKey(0)
    kp, kx, kc = jax.random.split(key, 3)
    params = init_params(kp, cfg)

    x = jax.random.normal(kx, (B, cfg["measures"], cfg["samples"], cfg["notes"]),
                          jnp.float32)
    c = jax.random.normal(kc, (B, cfg["class_size"]), jnp.float32)

    fwd = jax.jit(functools.partial(cvae_forward, cfg=cfg))
    x_hat, kl1, kl2 = fwd(params, x, c)
    x_hat = jax.block_until_ready(x_hat)

    assert x_hat.shape == (B, cfg["measures"], cfg["samples"], cfg["notes"])
    assert x_hat.dtype == jnp.float32
    assert bool(jnp.all(jnp.isfinite(x_hat)))
    print("KERNEL_OK")
</pallas_src>

<mosaic_0001>
module attributes {stable_mosaic.version = 11 : i64} {
  func.func @_cvae_kernel(%arg0: memref<8x128xf32, #tpu.memory_space<vmem>>, %arg1: memref<2x8xf32, #tpu.memory_space<vmem>>, %arg2: memref<584x128xf32, #tpu.memory_space<vmem>>, %arg3: memref<8x128xf32, #tpu.memory_space<vmem>>) attributes {dimension_semantics = [], scalar_prefetch = 0 : i64, scratch_operands = 0 : i64, tpu.core_type = #tpu.core_type<tc>} {
    %c544 = arith.constant 544 : index
    %c0 = arith.constant 0 : index
    %0 = vector.load %arg2[%c544, %c0] : memref<584x128xf32, #tpu.memory_space<vmem>>, vector<8x4xf32>
    %c552 = arith.constant 552 : index
    %c0_0 = arith.constant 0 : index
    %1 = vector.load %arg2[%c552, %c0_0] : memref<584x128xf32, #tpu.memory_space<vmem>>, vector<4x8xf32>
    %c0_1 = arith.constant 0 : index
    %c0_2 = arith.constant 0 : index
    %2 = vector.load %arg0[%c0_1, %c0_2] : memref<8x128xf32, #tpu.memory_space<vmem>>, vector<8x128xf32>
    %c0_3 = arith.constant 0 : index
    %c0_4 = arith.constant 0 : index
    %3 = vector.load %arg1[%c0_3, %c0_4] : memref<2x8xf32, #tpu.memory_space<vmem>>, vector<2x8xf32>
    %c128 = arith.constant 128 : index
    %c0_5 = arith.constant 0 : index
    %4 = vector.load %arg2[%c128, %c0_5] : memref<584x128xf32, #tpu.memory_space<vmem>>, vector<8x64xf32>
    %cst = arith.constant dense<0.000000e+00> : vector<2x64xf32>
    %5 = tpu.matmul %3, %4, %cst {dimension_numbers = #tpu.dot_dimension_numbers<[1], [0], [0], [1], [0, 0, 1, 1], [], []>} : vector<2x8xf32>, vector<8x64xf32>, vector<2x64xf32> -> vector<2x64xf32>
    %6 = tpu.concatenate %5, %5, %5, %5 in 0 : vector<2x64xf32>, vector<2x64xf32>, vector<2x64xf32>, vector<2x64xf32> -> vector<8x64xf32>
    %c0_6 = arith.constant 0 : index
    %c0_7 = arith.constant 0 : index
    %7 = vector.load %arg2[%c0_6, %c0_7] : memref<584x128xf32, #tpu.memory_space<vmem>>, vector<128x64xf32>
    %cst_8 = arith.constant dense<0.000000e+00> : vector<8x64xf32>
    %8 = tpu.matmul %2, %7, %cst_8 {dimension_numbers = #tpu.dot_dimension_numbers<[1], [0], [0], [1], [0, 0, 1, 1], [], []>} : vector<8x128xf32>, vector<128x64xf32>, vector<8x64xf32> -> vector<8x64xf32>
    %9 = arith.addf %8, %6 : vector<8x64xf32>
    %cst_9 = arith.constant dense<0.000000e+00> : vector<4x64xf32>
    %10 = tpu.matmul %1, %9, %cst_9 {dimension_numbers = #tpu.dot_dimension_numbers<[1], [0], [0], [1], [0, 0, 1, 1], [], []>} : vector<4x8xf32>, vector<8x64xf32>, vector<4x64xf32> -> vector<4x64xf32>
    %cst_10 = arith.constant 5.000000e-01 : f32
    %11 = vector.broadcast %cst_10 : f32 to vector<4x64xf32>
    %12 = arith.mulf %10, %11 : vector<4x64xf32>
    %13 = arith.mulf %9, %9 : vector<8x64xf32>
    %cst_11 = arith.constant dense<0.000000e+00> : vector<4x64xf32>
    %14 = tpu.matmul %1, %13, %cst_11 {dimension_numbers = #tpu.dot_dimension_numbers<[1], [0], [0], [1], [0, 0, 1, 1], [], []>} : vector<4x8xf32>, vector<8x64xf32>, vector<4x64xf32> -> vector<4x64xf32>
    %cst_12 = arith.constant 5.000000e-01 : f32
    %15 = vector.broadcast %cst_12 : f32 to vector<4x64xf32>
    %16 = arith.mulf %14, %15 : vector<4x64xf32>
    %17 = arith.mulf %12, %12 : vector<4x64xf32>
    %18 = arith.subf %16, %17 : vector<4x64xf32>
    %cst_13 = arith.constant 9.99999974E-6 : f32
    %19 = vector.broadcast %cst_13 : f32 to vector<4x64xf32>
    %20 = arith.addf %18, %19 : vector<4x64xf32>
    %21 = math.rsqrt %20 : vector<4x64xf32>
    %cst_14 = arith.constant dense<0.000000e+00> : vector<8x64xf32>
    %22 = tpu.matmul %0, %12, %cst_14 {dimension_numbers = #tpu.dot_dimension_numbers<[1], [0], [0], [1], [0, 0, 1, 1], [], []>} : vector<8x4xf32>, vector<4x64xf32>, vector<8x64xf32> -> vector<8x64xf32>
    %23 = arith.subf %9, %22 : vector<8x64xf32>
    %cst_15 = arith.constant dense<0.000000e+00> : vector<8x64xf32>
    %24 = tpu.matmul %0, %21, %cst_15 {dimension_numbers = #tpu.dot_dimension_numbers<[1], [0], [0], [1], [0, 0, 1, 1], [], []>} : vector<8x4xf32>, vector<4x64xf32>, vector<8x64xf32> -> vector<8x64xf32>
    %25 = arith.mulf %23, %24 : vector<8x64xf32>
    %c560 = arith.constant 560 : index
    %c0_16 = arith.constant 0 : index
    %26 = vector.load %arg2[%c560, %c0_16] : memref<584x128xf32, #tpu.memory_space<vmem>>, vector<1x64xf32>
    %27 = vector.broadcast %26 : vector<1x64xf32> to vector<8x64xf32>
    %28 = arith.mulf %25, %27 : vector<8x64xf32>
    %c561 = arith.constant 561 : index
    %c0_17 = arith.constant 0 : index
    %29 = vector.load %arg2[%c561, %c0_17] : memref<584x128xf32, #tpu.memory_space<vmem>>, vector<1x64xf32>
    %30 = vector.broadcast %29 : vector<1x64xf32> to vector<8x64xf32>
    %31 = arith.addf %28, %30 : vector<8x64xf32>
    %cst_18 = arith.constant 0.000000e+00 : f32
    %32 = vector.broadcast %cst_18 : f32 to vector<8x64xf32>
    %33 = arith.cmpf oge, %31, %32 : vector<8x64xf32>
    %c576 = arith.constant 576 : index
    %c0_19 = arith.constant 0 : index
    %34 = vector.load %arg2[%c576, %c0_19] : memref<584x128xf32, #tpu.memory_space<vmem>>, vector<1x64xf32>
    %35 = vector.broadcast %34 : vector<1x64xf32> to vector<8x64xf32>
    %36 = arith.mulf %35, %31 : vector<8x64xf32>
    %37 = arith.select %33, %31, %36 : vector<8x64xi1>, vector<8x64xf32>
    %c136 = arith.constant 136 : index
    %c0_20 = arith.constant 0 : index
    %38 = vector.load %arg2[%c136, %c0_20] : memref<584x128xf32, #tpu.memory_space<vmem>>, vector<64x32xf32>
    %cst_21 = arith.constant dense<0.000000e+00> : vector<8x32xf32>
    %39 = tpu.matmul %37, %38, %cst_21 {dimension_numbers = #tpu.dot_dimension_numbers<[1], [0], [0], [1], [0, 0, 1, 1], [], []>} : vector<8x64xf32>, vector<64x32xf32>, vector<8x32xf32> -> vector<8x32xf32>
    %cst_22 = arith.constant dense<0.000000e+00> : vector<4x32xf32>
    %40 = tpu.matmul %1, %39, %cst_22 {dimension_numbers = #tpu.dot_dimension_numbers<[1], [0], [0], [1], [0, 0, 1, 1], [], []>} : vector<4x8xf32>, vector<8x32xf32>, vector<4x32xf32> -> vector<4x32xf32>
    %cst_23 = arith.constant 5.000000e-01 : f32
    %41 = vector.broadcast %cst_23 : f32 to vector<4x32xf32>
    %42 = arith.mulf %40, %41 : vector<4x32xf32>
    %43 = arith.mulf %39, %39 : vector<8x32xf32>
    %cst_24 = arith.constant dense<0.000000e+00> : vector<4x32xf32>
    %44 = tpu.matmul %1, %43, %cst_24 {dimension_numbers = #tpu.dot_dimension_numbers<[1], [0], [0], [1], [0, 0, 1, 1], [], []>} : vector<4x8xf32>, vector<8x32xf32>, vector<4x32xf32> -> vector<4x32xf32>
    %cst_25 = arith.constant 5.000000e-01 : f32
    %45 = vector.broadcast %cst_25 : f32 to vector<4x32xf32>
    %46 = arith.mulf %44, %45 : vector<4x32xf32>
    %47 = arith.mulf %42, %42 : vector<4x32xf32>
    %48 = arith.subf %46, %47 : vector<4x32xf32>
    %cst_26 = arith.constant 9.99999974E-6 : f32
    %49 = vector.broadcast %cst_26 : f32 to vector<4x32xf32>
    %50 = arith.addf %48, %49 : vector<4x32xf32>
    %51 = math.rsqrt %50 : vector<4x32xf32>
    %cst_27 = arith.constant dense<0.000000e+00> : vector<8x32xf32>
    %52 = tpu.matmul %0, %42, %cst_27 {dimension_numbers = #tpu.dot_dimension_numbers<[1], [0], [0], [1], [0, 0, 1, 1], [], []>} : vector<8x4xf32>, vector<4x32xf32>, vector<8x32xf32> -> vector<8x32xf32>
    %53 = arith.subf %39, %52 : vector<8x32xf32>
    %cst_28 = arith.constant dense<0.000000e+00> : vector<8x32xf32>
    %54 = tpu.matmul %0, %51, %cst_28 {dimension_numbers = #tpu.dot_dimension_numbers<[1], [0], [0], [1], [0, 0, 1, 1], [], []>} : vector<8x4xf32>, vector<4x32xf32>, vector<8x32xf32> -> vector<8x32xf32>
    %55 = arith.mulf %53, %54 : vector<8x32xf32>
    %c562 = arith.constant 562 : index
    %c0_29 = arith.constant 0 : index
    %56 = vector.load %arg2[%c562, %c0_29] : memref<584x128xf32, #tpu.memory_space<vmem>>, vector<1x32xf32>
    %57 = vector.broadcast %56 : vector<1x32xf32> to vector<8x32xf32>
    %58 = arith.mulf %55, %57 : vector<8x32xf32>
    %c563 = arith.constant 563 : index
    %c0_30 = arith.constant 0 : index
    %59 = vector.load %arg2[%c563, %c0_30] : memref<584x128xf32, #tpu.memory_space<vmem>>, vector<1x32xf32>
    %60 = vector.broadcast %59 : vector<1x32xf32> to vector<8x32xf32>
    %61 = arith.addf %58, %60 : vector<8x32xf32>
    %cst_31 = arith.constant 0.000000e+00 : f32
    %62 = vector.broadcast %cst_31 : f32 to vector<8x32xf32>
    %63 = arith.cmpf oge, %61, %62 : vector<8x32xf32>
    %c577 = arith.constant 577 : index
    %c0_32 = arith.constant 0 : index
    %64 = vector.load %arg2[%c577, %c0_32] : memref<584x128xf32, #tpu.memory_space<vmem>>, vector<1x32xf32>
    %65 = vector.broadcast %64 : vector<1x32xf32> to vector<8x32xf32>
    %66 = arith.mulf %65, %61 : vector<8x32xf32>
    %67 = arith.select %63, %61, %66 : vector<8x32xi1>, vector<8x32xf32>
    %68 = vector.extract_strided_slice %67 {offsets = [0, 0], sizes = [2, 32], strides = [1, 1]} : vector<8x32xf32> to vector<2x32xf32>
    %69 = vector.extract_strided_slice %67 {offsets = [2, 0], sizes = [2, 32], strides = [1, 1]} : vector<8x32xf32> to vector<2x32xf32>
    %70 = vector.extract_strided_slice %67 {offsets = [4, 0], sizes = [2, 32], strides = [1, 1]} : vector<8x32xf32> to vector<2x32xf32>
    %71 = vector.extract_strided_slice %67 {offsets = [6, 0], sizes = [2, 32], strides = [1, 1]} : vector<8x32xf32> to vector<2x32xf32>
    %72 = tpu.concatenate %68, %69, %70, %71 in 1 : vector<2x32xf32>, vector<2x32xf32>, vector<2x32xf32>, vector<2x32xf32> -> vector<2x128xf32>
    %c200 = arith.constant 200 : index
    %c0_33 = arith.constant 0 : index
    %73 = vector.load %arg2[%c200, %c0_33] : memref<584x128xf32, #tpu.memory_space<vmem>>, vector<128x32xf32>
    %cst_34 = arith.constant dense<0.000000e+00> : vector<2x32xf32>
    %74 = tpu.matmul %72, %73, %cst_34 {dimension_numbers = #tpu.dot_dimension_numbers<[1], [0], [0], [1], [0, 0, 1, 1], [], []>} : vector<2x128xf32>, vector<128x32xf32>, vector<2x32xf32> -> vector<2x32xf32>
    %cst_35 = arith.constant dense<0.000000e+00> : vector<32xf32>
    %75 = vector.multi_reduction <add>, %74, %cst_35 [0] : vector<2x32xf32> to vector<32xf32>
    %76 = vector.shape_cast %75 : vector<32xf32> to vector<1x32xf32>
    %cst_36 = arith.constant 2.000000e+00 : f32
    %77 = vector.broadcast %cst_36 : f32 to vector<1x32xf32>
    %78 = arith.divf %76, %77 : vector<1x32xf32>
    %79 = arith.mulf %74, %74 : vector<2x32xf32>
    %cst_37 = arith.constant dense<0.000000e+00> : vector<32xf32>
    %80 = vector.multi_reduction <add>, %79, %cst_37 [0] : vector<2x32xf32> to vector<32xf32>
    %81 = vector.shape_cast %80 : vector<32xf32> to vector<1x32xf32>
    %cst_38 = arith.constant 2.000000e+00 : f32
    %82 = vector.broadcast %cst_38 : f32 to vector<1x32xf32>
    %83 = arith.divf %81, %82 : vector<1x32xf32>
    %84 = arith.mulf %78, %78 : vector<1x32xf32>
    %85 = arith.subf %83, %84 : vector<1x32xf32>
    %86 = vector.broadcast %78 : vector<1x32xf32> to vector<2x32xf32>
    %87 = arith.subf %74, %86 : vector<2x32xf32>
    %cst_39 = arith.constant 9.99999974E-6 : f32
    %88 = vector.broadcast %cst_39 : f32 to vector<1x32xf32>
    %89 = arith.addf %85, %88 : vector<1x32xf32>
    %90 = math.rsqrt %89 : vector<1x32xf32>
    %91 = vector.broadcast %90 : vector<1x32xf32> to vector<2x32xf32>
    %92 = arith.mulf %87, %91 : vector<2x32xf32>
    %c564 = arith.constant 564 : index
    %c0_40 = arith.constant 0 : index
    %93 = vector.load %arg2[%c564, %c0_40] : memref<584x128xf32, #tpu.memory_space<vmem>>, vector<1x32xf32>
    %94 = vector.broadcast %93 : vector<1x32xf32> to vector<2x32xf32>
    %95 = arith.mulf %92, %94 : vector<2x32xf32>
    %c565 = arith.constant 565 : index
    %c0_41 = arith.constant 0 : index
    %96 = vector.load %arg2[%c565, %c0_41] : memref<584x128xf32, #tpu.memory_space<vmem>>, vector<1x32xf32>
    %97 = vector.broadcast %96 : vector<1x32xf32> to vector<2x32xf32>
    %98 = arith.addf %95, %97 : vector<2x32xf32>
    %cst_42 = arith.constant 0.000000e+00 : f32
    %99 = vector.broadcast %cst_42 : f32 to vector<2x32xf32>
    %100 = arith.cmpf oge, %98, %99 : vector<2x32xf32>
    %c578 = arith.constant 578 : index
    %c0_43 = arith.constant 0 : index
    %101 = vector.load %arg2[%c578, %c0_43] : memref<584x128xf32, #tpu.memory_space<vmem>>, vector<1x32xf32>
    %102 = vector.broadcast %101 : vector<1x32xf32> to vector<2x32xf32>
    %103 = arith.mulf %102, %98 : vector<2x32xf32>
    %104 = arith.select %100, %98, %103 : vector<2x32xi1>, vector<2x32xf32>
    %c328 = arith.constant 328 : index
    %c0_44 = arith.constant 0 : index
    %105 = vector.load %arg2[%c328, %c0_44] : memref<584x128xf32, #tpu.memory_space<vmem>>, vector<32x16xf32>
    %cst_45 = arith.constant dense<0.000000e+00> : vector<2x16xf32>
    %106 = tpu.matmul %104, %105, %cst_45 {dimension_numbers = #tpu.dot_dimension_numbers<[1], [0], [0], [1], [0, 0, 1, 1], [], []>} : vector<2x32xf32>, vector<32x16xf32>, vector<2x16xf32> -> vector<2x16xf32>
    %cst_46 = arith.constant dense<0.000000e+00> : vector<16xf32>
    %107 = vector.multi_reduction <add>, %106, %cst_46 [0] : vector<2x16xf32> to vector<16xf32>
    %108 = vector.shape_cast %107 : vector<16xf32> to vector<1x16xf32>
    %cst_47 = arith.constant 2.000000e+00 : f32
    %109 = vector.broadcast %cst_47 : f32 to vector<1x16xf32>
    %110 = arith.divf %108, %109 : vector<1x16xf32>
    %111 = arith.mulf %106, %106 : vector<2x16xf32>
    %cst_48 = arith.constant dense<0.000000e+00> : vector<16xf32>
    %112 = vector.multi_reduction <add>, %111, %cst_48 [0] : vector<2x16xf32> to vector<16xf32>
    %113 = vector.shape_cast %112 : vector<16xf32> to vector<1x16xf32>
    %cst_49 = arith.constant 2.000000e+00 : f32
    %114 = vector.broadcast %cst_49 : f32 to vector<1x16xf32>
    %115 = arith.divf %113, %114 : vector<1x16xf32>
    %116 = arith.mulf %110, %110 : vector<1x16xf32>
    %117 = arith.subf %115, %116 : vector<1x16xf32>
    %118 = vector.broadcast %110 : vector<1x16xf32> to vector<2x16xf32>
    %119 = arith.subf %106, %118 : vector<2x16xf32>
    %cst_50 = arith.constant 9.99999974E-6 : f32
    %120 = vector.broadcast %cst_50 : f32 to vector<1x16xf32>
    %121 = arith.addf %117, %120 : vector<1x16xf32>
    %122 = math.rsqrt %121 : vector<1x16xf32>
    %123 = vector.broadcast %122 : vector<1x16xf32> to vector<2x16xf32>
    %124 = arith.mulf %119, %123 : vector<2x16xf32>
    %c566 = arith.constant 566 : index
    %c0_51 = arith.constant 0 : index
    %125 = vector.load %arg2[%c566, %c0_51] : memref<584x128xf32, #tpu.memory_space<vmem>>, vector<1x16xf32>
    %126 = vector.broadcast %125 : vector<1x16xf32> to vector<2x16xf32>
    %127 = arith.mulf %124, %126 : vector<2x16xf32>
    %c567 = arith.constant 567 : index
    %c0_52 = arith.constant 0 : index
    %128 = vector.load %arg2[%c567, %c0_52] : memref<584x128xf32, #tpu.memory_space<vmem>>, vector<1x16xf32>
    %129 = vector.broadcast %128 : vector<1x16xf32> to vector<2x16xf32>
    %130 = arith.addf %127, %129 : vector<2x16xf32>
    %c360 = arith.constant 360 : index
    %c0_53 = arith.constant 0 : index
    %131 = vector.load %arg2[%c360, %c0_53] : memref<584x128xf32, #tpu.memory_space<vmem>>, vector<16x32xf32>
    %cst_54 = arith.constant dense<0.000000e+00> : vector<2x32xf32>
    %132 = tpu.matmul %130, %131, %cst_54 {dimension_numbers = #tpu.dot_dimension_numbers<[1], [0], [0], [1], [0, 0, 1, 1], [], []>} : vector<2x16xf32>, vector<16x32xf32>, vector<2x32xf32> -> vector<2x32xf32>
    %c376 = arith.constant 376 : index
    %c0_55 = arith.constant 0 : index
    %133 = vector.load %arg2[%c376, %c0_55] : memref<584x128xf32, #tpu.memory_space<vmem>>, vector<8x32xf32>
    %cst_56 = arith.constant dense<0.000000e+00> : vector<2x32xf32>
    %134 = tpu.matmul %3, %133, %cst_56 {dimension_numbers = #tpu.dot_dimension_numbers<[1], [0], [0], [1], [0, 0, 1, 1], [], []>} : vector<2x8xf32>, vector<8x32xf32>, vector<2x32xf32> -> vector<2x32xf32>
    %135 = arith.addf %132, %134 : vector<2x32xf32>
    %cst_57 = arith.constant dense<0.000000e+00> : vector<32xf32>
    %136 = vector.multi_reduction <add>, %135, %cst_57 [0] : vector<2x32xf32> to vector<32xf32>
    %137 = vector.shape_cast %136 : vector<32xf32> to vector<1x32xf32>
    %cst_58 = arith.constant 2.000000e+00 : f32
    %138 = vector.broadcast %cst_58 : f32 to vector<1x32xf32>
    %139 = arith.divf %137, %138 : vector<1x32xf32>
    %140 = arith.mulf %135, %135 : vector<2x32xf32>
    %cst_59 = arith.constant dense<0.000000e+00> : vector<32xf32>
    %141 = vector.multi_reduction <add>, %140, %cst_59 [0] : vector<2x32xf32> to vector<32xf32>
    %142 = vector.shape_cast %141 : vector<32xf32> to vector<1x32xf32>
    %cst_60 = arith.constant 2.000000e+00 : f32
    %143 = vector.broadcast %cst_60 : f32 to vector<1x32xf32>
    %144 = arith.divf %142, %143 : vector<1x32xf32>
    %145 = arith.mulf %139, %139 : vector<1x32xf32>
    %146 = arith.subf %144, %145 : vector<1x32xf32>
    %147 = vector.broadcast %139 : vector<1x32xf32> to vector<2x32xf32>
    %148 = arith.subf %135, %147 : vector<2x32xf32>
    %cst_61 = arith.constant 9.99999974E-6 : f32
    %149 = vector.broadcast %cst_61 : f32 to vector<1x32xf32>
    %150 = arith.addf %146, %149 : vector<1x32xf32>
    %151 = math.rsqrt %150 : vector<1x32xf32>
    %152 = vector.broadcast %151 : vector<1x32xf32> to vector<2x32xf32>
    %153 = arith.mulf %148, %152 : vector<2x32xf32>
    %c568 = arith.constant 568 : index
    %c0_62 = arith.constant 0 : index
    %154 = vector.load %arg2[%c568, %c0_62] : memref<584x128xf32, #tpu.memory_space<vmem>>, vector<1x32xf32>
    %155 = vector.broadcast %154 : vector<1x32xf32> to vector<2x32xf32>
    %156 = arith.mulf %153, %155 : vector<2x32xf32>
    %c569 = arith.constant 569 : index
    %c0_63 = arith.constant 0 : index
    %157 = vector.load %arg2[%c569, %c0_63] : memref<584x128xf32, #tpu.memory_space<vmem>>, vector<1x32xf32>
    %158 = vector.broadcast %157 : vector<1x32xf32> to vector<2x32xf32>
    %159 = arith.addf %156, %158 : vector<2x32xf32>
    %cst_64 = arith.constant 0.000000e+00 : f32
    %160 = vector.broadcast %cst_64 : f32 to vector<2x32xf32>
    %161 = arith.cmpf oge, %159, %160 : vector<2x32xf32>
    %c579 = arith.constant 579 : index
    %c0_65 = arith.constant 0 : index
    %162 = vector.load %arg2[%c579, %c0_65] : memref<584x128xf32, #tpu.memory_space<vmem>>, vector<1x32xf32>
    %163 = vector.broadcast %162 : vector<1x32xf32> to vector<2x32xf32>
    %164 = arith.mulf %163, %159 : vector<2x32xf32>
    %165 = arith.select %161, %159, %164 : vector<2x32xi1>, vector<2x32xf32>
    %c384 = arith.constant 384 : index
    %c0_66 = arith.constant 0 : index
    %166 = vector.load %arg2[%c384, %c0_66] : memref<584x128xf32, #tpu.memory_space<vmem>>, vector<32x32xf32>
    %cst_67 = arith.constant dense<0.000000e+00> : vector<2x32xf32>
    %167 = tpu.matmul %165, %166, %cst_67 {dimension_numbers = #tpu.dot_dimension_numbers<[1], [0], [0], [1], [0, 0, 1, 1], [], []>} : vector<2x32xf32>, vector<32x32xf32>, vector<2x32xf32> -> vector<2x32xf32>
    %cst_68 = arith.constant dense<0.000000e+00> : vector<32xf32>
    %168 = vector.multi_reduction <add>, %167, %cst_68 [0] : vector<2x32xf32> to vector<32xf32>
    %169 = vector.shape_cast %168 : vector<32xf32> to vector<1x32xf32>
    %cst_69 = arith.constant 2.000000e+00 : f32
    %170 = vector.broadcast %cst_69 : f32 to vector<1x32xf32>
    %171 = arith.divf %169, %170 : vector<1x32xf32>
    %172 = arith.mulf %167, %167 : vector<2x32xf32>
    %cst_70 = arith.constant dense<0.000000e+00> : vector<32xf32>
    %173 = vector.multi_reduction <add>, %172, %cst_70 [0] : vector<2x32xf32> to vector<32xf32>
    %174 = vector.shape_cast %173 : vector<32xf32> to vector<1x32xf32>
    %cst_71 = arith.constant 2.000000e+00 : f32
    %175 = vector.broadcast %cst_71 : f32 to vector<1x32xf32>
    %176 = arith.divf %174, %175 : vector<1x32xf32>
    %177 = arith.mulf %171, %171 : vector<1x32xf32>
    %178 = arith.subf %176, %177 : vector<1x32xf32>
    %179 = vector.broadcast %171 : vector<1x32xf32> to vector<2x32xf32>
    %180 = arith.subf %167, %179 : vector<2x32xf32>
    %cst_72 = arith.constant 9.99999974E-6 : f32
    %181 = vector.broadcast %cst_72 : f32 to vector<1x32xf32>
    %182 = arith.addf %178, %181 : vector<1x32xf32>
    %183 = math.rsqrt %182 : vector<1x32xf32>
    %184 = vector.broadcast %183 : vector<1x32xf32> to vector<2x32xf32>
    %185 = arith.mulf %180, %184 : vector<2x32xf32>
    %c570 = arith.constant 570 : index
    %c0_73 = arith.constant 0 : index
    %186 = vector.load %arg2[%c570, %c0_73] : memref<584x128xf32, #tpu.memory_space<vmem>>, vector<1x32xf32>
    %187 = vector.broadcast %186 : vector<1x32xf32> to vector<2x32xf32>
    %188 = arith.mulf %185, %187 : vector<2x32xf32>
    %c571 = arith.constant 571 : index
    %c0_74 = arith.constant 0 : index
    %189 = vector.load %arg2[%c571, %c0_74] : memref<584x128xf32, #tpu.memory_space<vmem>>, vector<1x32xf32>
    %190 = vector.broadcast %189 : vector<1x32xf32> to vector<2x32xf32>
    %191 = arith.addf %188, %190 : vector<2x32xf32>
    %cst_75 = arith.constant 0.000000e+00 : f32
    %192 = vector.broadcast %cst_75 : f32 to vector<2x32xf32>
    %193 = arith.cmpf oge, %191, %192 : vector<2x32xf32>
    %c580 = arith.constant 580 : index
    %c0_76 = arith.constant 0 : index
    %194 = vector.load %arg2[%c580, %c0_76] : memref<584x128xf32, #tpu.memory_space<vmem>>, vector<1x32xf32>
    %195 = vector.broadcast %194 : vector<1x32xf32> to vector<2x32xf32>
    %196 = arith.mulf %195, %191 : vector<2x32xf32>
    %197 = arith.select %193, %191, %196 : vector<2x32xi1>, vector<2x32xf32>
    %c416 = arith.constant 416 : index
    %c0_77 = arith.constant 0 : index
    %198 = vector.load %arg2[%c416, %c0_77] : memref<584x128xf32, #tpu.memory_space<vmem>>, vector<32x128xf32>
    %cst_78 = arith.constant dense<0.000000e+00> : vector<2x128xf32>
    %199 = tpu.matmul %197, %198, %cst_78 {dimension_numbers = #tpu.dot_dimension_numbers<[1], [0], [0], [1], [0, 0, 1, 1], [], []>} : vector<2x32xf32>, vector<32x128xf32>, vector<2x128xf32> -> vector<2x128xf32>
    %cst_79 = arith.constant dense<0.000000e+00> : vector<128xf32>
    %200 = vector.multi_reduction <add>, %199, %cst_79 [0] : vector<2x128xf32> to vector<128xf32>
    %201 = vector.shape_cast %200 : vector<128xf32> to vector<1x128xf32>
    %cst_80 = arith.constant 2.000000e+00 : f32
    %202 = vector.broadcast %cst_80 : f32 to vector<1x128xf32>
    %203 = arith.divf %201, %202 : vector<1x128xf32>
    %204 = arith.mulf %199, %199 : vector<2x128xf32>
    %cst_81 = arith.constant dense<0.000000e+00> : vector<128xf32>
    %205 = vector.multi_reduction <add>, %204, %cst_81 [0] : vector<2x128xf32> to vector<128xf32>
    %206 = vector.shape_cast %205 : vector<128xf32> to vector<1x128xf32>
    %cst_82 = arith.constant 2.000000e+00 : f32
    %207 = vector.broadcast %cst_82 : f32 to vector<1x128xf32>
    %208 = arith.divf %206, %207 : vector<1x128xf32>
    %209 = arith.mulf %203, %203 : vector<1x128xf32>
    %210 = arith.subf %208, %209 : vector<1x128xf32>
    %211 = vector.broadcast %203 : vector<1x128xf32> to vector<2x128xf32>
    %212 = arith.subf %199, %211 : vector<2x128xf32>
    %cst_83 = arith.constant 9.99999974E-6 : f32
    %213 = vector.broadcast %cst_83 : f32 to vector<1x128xf32>
    %214 = arith.addf %210, %213 : vector<1x128xf32>
    %215 = math.rsqrt %214 : vector<1x128xf32>
    %216 = vector.broadcast %215 : vector<1x128xf32> to vector<2x128xf32>
    %217 = arith.mulf %212, %216 : vector<2x128xf32>
    %c572 = arith.constant 572 : index
    %c0_84 = arith.constant 0 : index
    %218 = vector.load %arg2[%c572, %c0_84] : memref<584x128xf32, #tpu.memory_space<vmem>>, vector<1x128xf32>
    %219 = vector.broadcast %218 : vector<1x128xf32> to vector<2x128xf32>
    %220 = arith.mulf %217, %219 : vector<2x128xf32>
    %c573 = arith.constant 573 : index
    %c0_85 = arith.constant 0 : index
    %221 = vector.load %arg2[%c573, %c0_85] : memref<584x128xf32, #tpu.memory_space<vmem>>, vector<1x128xf32>
    %222 = vector.broadcast %221 : vector<1x128xf32> to vector<2x128xf32>
    %223 = arith.addf %220, %222 : vector<2x128xf32>
    %cst_86 = arith.constant 0.000000e+00 : f32
    %224 = vector.broadcast %cst_86 : f32 to vector<2x128xf32>
    %225 = arith.cmpf oge, %223, %224 : vector<2x128xf32>
    %c581 = arith.constant 581 : index
    %c0_87 = arith.constant 0 : index
    %226 = vector.load %arg2[%c581, %c0_87] : memref<584x128xf32, #tpu.memory_space<vmem>>, vector<1x128xf32>
    %227 = vector.broadcast %226 : vector<1x128xf32> to vector<2x128xf32>
    %228 = arith.mulf %227, %223 : vector<2x128xf32>
    %229 = arith.select %225, %223, %228 : vector<2x128xi1>, vector<2x128xf32>
    %230 = vector.extract_strided_slice %229 {offsets = [0, 0], sizes = [2, 32], strides = [1, 1]} : vector<2x128xf32> to vector<2x32xf32>
    %231 = vector.extract_strided_slice %229 {offsets = [0, 32], sizes = [2, 32], strides = [1, 1]} : vector<2x128xf32> to vector<2x32xf32>
    %232 = vector.extract_strided_slice %229 {offsets = [0, 64], sizes = [2, 32], strides = [1, 1]} : vector<2x128xf32> to vector<2x32xf32>
    %233 = vector.extract_strided_slice %229 {offsets = [0, 96], sizes = [2, 32], strides = [1, 1]} : vector<2x128xf32> to vector<2x32xf32>
    %234 = tpu.concatenate %230, %231, %232, %233 in 0 : vector<2x32xf32>, vector<2x32xf32>, vector<2x32xf32>, vector<2x32xf32> -> vector<8x32xf32>
    %c448 = arith.constant 448 : index
    %c0_88 = arith.constant 0 : index
    %235 = vector.load %arg2[%c448, %c0_88] : memref<584x128xf32, #tpu.memory_space<vmem>>, vector<32x64xf32>
    %cst_89 = arith.constant dense<0.000000e+00> : vector<8x64xf32>
    %236 = tpu.matmul %234, %235, %cst_89 {dimension_numbers = #tpu.dot_dimension_numbers<[1], [0], [0], [1], [0, 0, 1, 1], [], []>} : vector<8x32xf32>, vector<32x64xf32>, vector<8x64xf32> -> vector<8x64xf32>
    %cst_90 = arith.constant dense<0.000000e+00> : vector<4x64xf32>
    %237 = tpu.matmul %1, %236, %cst_90 {dimension_numbers = #tpu.dot_dimension_numbers<[1], [0], [0], [1], [0, 0, 1, 1], [], []>} : vector<4x8xf32>, vector<8x64xf32>, vector<4x64xf32> -> vector<4x64xf32>
    %cst_91 = arith.constant 5.000000e-01 : f32
    %238 = vector.broadcast %cst_91 : f32 to vector<4x64xf32>
    %239 = arith.mulf %237, %238 : vector<4x64xf32>
    %240 = arith.mulf %236, %236 : vector<8x64xf32>
    %cst_92 = arith.constant dense<0.000000e+00> : vector<4x64xf32>
    %241 = tpu.matmul %1, %240, %cst_92 {dimension_numbers = #tpu.dot_dimension_numbers<[1], [0], [0], [1], [0, 0, 1, 1], [], []>} : vector<4x8xf32>, vector<8x64xf32>, vector<4x64xf32> -> vector<4x64xf32>
    %cst_93 = arith.constant 5.000000e-01 : f32
    %242 = vector.broadcast %cst_93 : f32 to vector<4x64xf32>
    %243 = arith.mulf %241, %242 : vector<4x64xf32>
    %244 = arith.mulf %239, %239 : vector<4x64xf32>
    %245 = arith.subf %243, %244 : vector<4x64xf32>
    %cst_94 = arith.constant 9.99999974E-6 : f32
    %246 = vector.broadcast %cst_94 : f32 to vector<4x64xf32>
    %247 = arith.addf %245, %246 : vector<4x64xf32>
    %248 = math.rsqrt %247 : vector<4x64xf32>
    %cst_95 = arith.constant dense<0.000000e+00> : vector<8x64xf32>
    %249 = tpu.matmul %0, %239, %cst_95 {dimension_numbers = #tpu.dot_dimension_numbers<[1], [0], [0], [1], [0, 0, 1, 1], [], []>} : vector<8x4xf32>, vector<4x64xf32>, vector<8x64xf32> -> vector<8x64xf32>
    %250 = arith.subf %236, %249 : vector<8x64xf32>
    %cst_96 = arith.constant dense<0.000000e+00> : vector<8x64xf32>
    %251 = tpu.matmul %0, %248, %cst_96 {dimension_numbers = #tpu.dot_dimension_numbers<[1], [0], [0], [1], [0, 0, 1, 1], [], []>} : vector<8x4xf32>, vector<4x64xf32>, vector<8x64xf32> -> vector<8x64xf32>
    %252 = arith.mulf %250, %251 : vector<8x64xf32>
    %c574 = arith.constant 574 : index
    %c0_97 = arith.constant 0 : index
    %253 = vector.load %arg2[%c574, %c0_97] : memref<584x128xf32, #tpu.memory_space<vmem>>, vector<1x64xf32>
    %254 = vector.broadcast %253 : vector<1x64xf32> to vector<8x64xf32>
    %255 = arith.mulf %252, %254 : vector<8x64xf32>
    %c575 = arith.constant 575 : index
    %c0_98 = arith.constant 0 : index
    %256 = vector.load %arg2[%c575, %c0_98] : memref<584x128xf32, #tpu.memory_space<vmem>>, vector<1x64xf32>
    %257 = vector.broadcast %256 : vector<1x64xf32> to vector<8x64xf32>
    %258 = arith.addf %255, %257 : vector<8x64xf32>
    %cst_99 = arith.constant 0.000000e+00 : f32
    %259 = vector.broadcast %cst_99 : f32 to vector<8x64xf32>
    %260 = arith.cmpf oge, %258, %259 : vector<8x64xf32>
    %c582 = arith.constant 582 : index
    %c0_100 = arith.constant 0 : index
    %261 = vector.load %arg2[%c582, %c0_100] : memref<584x128xf32, #tpu.memory_space<vmem>>, vector<1x64xf32>
    %262 = vector.broadcast %261 : vector<1x64xf32> to vector<8x64xf32>
    %263 = arith.mulf %262, %258 : vector<8x64xf32>
    %264 = arith.select %260, %258, %263 : vector<8x64xi1>, vector<8x64xf32>
    %c480 = arith.constant 480 : index
    %c0_101 = arith.constant 0 : index
    %265 = vector.load %arg2[%c480, %c0_101] : memref<584x128xf32, #tpu.memory_space<vmem>>, vector<64x128xf32>
    %cst_102 = arith.constant dense<0.000000e+00> : vector<8x128xf32>
    %266 = tpu.matmul %264, %265, %cst_102 {dimension_numbers = #tpu.dot_dimension_numbers<[1], [0], [0], [1], [0, 0, 1, 1], [], []>} : vector<8x64xf32>, vector<64x128xf32>, vector<8x128xf32> -> vector<8x128xf32>
    %c0_103 = arith.constant 0 : index
    %c0_104 = arith.constant 0 : index
    %267 = vector.load %arg3[%c0_103, %c0_104] : memref<8x128xf32, #tpu.memory_space<vmem>>, vector<8x128xf32>
    tpu.vector_store %arg3[%c0_103, %c0_104], %266 {strides = array<i32>} : memref<8x128xf32, #tpu.memory_space<vmem>>, vector<8x128xf32>,
    return
  }
}

</mosaic_0001>

<bundles_post_ra>
// kernel: cvae_forward.1
= control target key start
LH: loop header
LB: loop body
LE: loop exit
PB: predicated region body
PF: predicated region fallthrough
CT: control target
= control target key end

     0   :  { %v2500_v0 = vmov 0.0   ;;  %vm2501_vm0 = vmmov 0   ;;  %vm19_vm1 = vcmask 64512   ;;  %vm100_vm2 = vcmask 1041408   ;;  %s2502_s27 = smov 96   ;;  %s2504_s28 = smov 64   ;;  %s3019_s2 = inlined_call_operand.vmem [shape: f32[584,128], index: 2, kind: input, shape index: {}]   ;;  %s3020_s1 = inlined_call_operand.vmem [shape: f32[2,8], index: 1, kind: input, shape index: {}]   ;;  %s3021_s0 = inlined_call_operand.vmem [shape: f32[8,128], index: 0, kind: input, shape index: {}]   ;;  %s3022_s3 = inlined_call_operand.vmem [shape: f32[8,128], index: 3, kind: output, shape index: {}]  }
   0x1   :  { %2255 = vmatprep.subr.mxu1 %v2500_v0  ;;  %v121_v1 = vld [vmem:[%s3019_s2 + $0x78] sm:$0xff]  ;;  %v120_v2 = vld [vmem:[%s3019_s2 + $0x70] sm:$0xff]  ;;  %2250 = vmatprep.subr.mxu0 %v2500_v0  ;;  %v119_v3 = vld [vmem:[%s3019_s2 + $0x68] sm:$0xff]  ;;  %vm102_vm3 = vcmask 1043456   ;;  %vm104_vm4 = vcmask 1045504   ;;  %vm342_vm5 = vcmask 31744  }
   0x2   :  { %2256 = vmatpush3.msra.mxu1 %v121_v1  ;;  %2252 = vmatprep.mubr.msk.f32.mxu0 %vm2501_vm0, %v2500_v0  ;;  %v118_v4 = vld [vmem:[%s3019_s2 + $0x60] sm:$0xff]  ;;  %v117_v7 = vld [vmem:[%s3019_s2 + $0x58] sm:$0xff]  ;;  %v116_v8 = vld [vmem:[%s3019_s2 + $0x50] sm:$0xff]  ;;  %vm522_vm7 = vcmask 523264   ;;  %vm924_vm9 = vcmask 261120   ;;  %vm927_vm10 = vcmask 785408  }
   0x3   :  { %2257 = vmatprep.subr.mxu1 %v2500_v0  ;;  %2287 = vmatprep.mubr.msk.f32.mxu1 %vm2501_vm0, %v2500_v0  ;;  %v18_v5 = vld [vmem:[%s3019_s2 + $0x80] sm:$0xff]  ;;  %v115_v9 = vld [vmem:[%s3019_s2 + $0x48] sm:$0xff]  ;;  %v113_v11 = vld [vmem:[%s3019_s2 + $0x38] sm:$0xff]  ;;  %vm1015_vm11 = vcmask 254976   ;;  %vm1137_vm13 = vcmask 123904   ;;  %vm1246_vm14 = vcmask 130048  }
   0x4   :  { %2258 = vmatpush3.msra.mxu1 %v120_v2  ;;  %v2551_v6 = vld [vmem:[%s3020_s1] sm:$0x3]  ;;  %2251 = vmatpush3.msra.mxu0 %v18_v5  ;;  %v112_v12 = vld [vmem:[%s3019_s2 + $0x30] sm:$0xff]  ;;  %v111_v13 = vld [vmem:[%s3019_s2 + $0x28] sm:$0xff]  ;;  %s2503_s1 = smov 32  }
   0x5   :  { %2259 = vmatprep.subr.mxu1 %v2500_v0  ;;  %2253 = vmatmul.mubr.msk.f32.vlgmr.msra.gmra.mxu0 %vm19_vm1, %v2551_v6  ;;  %v114_v10 = vld [vmem:[%s3019_s2 + $0x40] sm:$0xff]  ;;  %v109_v15 = vld [vmem:[%s3019_s2 + $0x18] sm:$0xff]  ;;  %v108_v16 = vld [vmem:[%s3019_s2 + $0x10] sm:$0xff] }
   0x6   :  { %2260 = vmatpush3.msra.mxu1 %v119_v3  ;;  %2290 = vmatprep.subr.mxu0 %v2500_v0  ;;  %v110_v14 = vld [vmem:[%s3019_s2 + $0x20] sm:$0xff]  ;;  %v107_v17 = vld [vmem:[%s3019_s2 + $0x8] sm:$0xff]  ;;  %v520_v45 = vld [vmem:[%s3019_s2 + $0xb8] sm:$0xff] }
   0x7   :  { %2261 = vmatprep.subr.mxu1 %v2500_v0  ;;  %2292 = vmatprep.mubr.msk.f32.mxu0 %vm2501_vm0, %v2500_v0  ;;  %v106_v18 = vld [vmem:[%s3019_s2] sm:$0xff]  ;;  %v2621_v30 = vld [vmem:[%s3019_s2 + $0x228] sm:$0xf]  ;;  %v519_v46 = vld [vmem:[%s3019_s2 + $0xb0] sm:$0xff] }
   0x8   :  { %2262 = vmatpush3.msra.mxu1 %v118_v4  ;;  %v16_v19 = vld [vmem:[%s3021_s0] sm:$0xff]  ;;  %v518_v47 = vld [vmem:[%s3019_s2 + $0xa8] sm:$0xff]  ;;  %v516_v49 = vld [vmem:[%s3019_s2 + $0x98] sm:$0xff] }
   0x9   :  { %2263 = vmatprep.subr.mxu1 %v2500_v0  ;;  %v2639_v35 = vld [vmem:[%s3019_s2 + $0x220] sm:$0xff]  ;;  %v515_v50 = vld [vmem:[%s3019_s2 + $0x90] sm:$0xff]  ;;  %v514_v51 = vld [vmem:[%s3019_s2 + $0x88] sm:$0xff] }
   0xa   :  { %2264 = vmatpush3.msra.mxu1 %v117_v7  ;;  %v521_v44 = vld [vmem:[%s3019_s2 + $0xc0] sm:$0xff]  ;;  %v2104_v56 = vld [vmem:[%s3019_s2 + $0x230] ss:$0 sm:$0xff]  ;;  %v2105_v58 = vld [vmem:[%s3019_s2 + $0x231] ss:$0 sm:$0xff] }
   0xb   :  { %2265 = vmatprep.subr.mxu1 %v2500_v0  ;;  %v517_v48 = vld [vmem:[%s3019_s2 + $0xa0] sm:$0xff] }
   0xc   :  { %2266 = vmatpush3.msra.mxu1 %v116_v8  ;;  %v2106_v61 = vld [vmem:[%s3019_s2 + $0x240] ss:$0 sm:$0xff] }
   0xd   :  { %2267 = vmatprep.subr.mxu1 %v2500_v0 }
   0xe   :  { %2268 = vmatpush3.msra.mxu1 %v115_v9 }
   0xf   :  { %2269 = vmatprep.subr.mxu1 %v2500_v0 }
  0x10   :  { %2270 = vmatpush3.msra.mxu1 %v114_v10 }
  0x11   :  { %2271 = vmatprep.subr.mxu1 %v2500_v0 }
  0x12   :  { %2272 = vmatpush3.msra.mxu1 %v113_v11 }
  0x13   :  { %2273 = vmatprep.subr.mxu1 %v2500_v0 }
  0x14   :  { %2274 = vmatpush3.msra.mxu1 %v112_v12 }
  0x15   :  { %2275 = vmatprep.subr.mxu1 %v2500_v0 }
  0x16   :  { %2276 = vmatpush3.msra.mxu1 %v111_v13 }
  0x17   :  { %2277 = vmatprep.subr.mxu1 %v2500_v0 }
  0x18   :  { %2278 = vmatpush3.msra.mxu1 %v110_v14 }
  0x19   :  { %2279 = vmatprep.subr.mxu1 %v2500_v0 }
  0x1a   :  { %2280 = vmatpush3.msra.mxu1 %v109_v15 }
  0x1b   :  { %2281 = vmatprep.subr.mxu1 %v2500_v0 }
  0x1c   :  { %2282 = vmatpush3.msra.mxu1 %v108_v16  ;;  %v944_v16 = vld [vmem:[%s3019_s2 + $0x140] sm:$0xff] }
  0x1d   :  { %2283 = vmatprep.subr.mxu1 %v2500_v0 }
  0x1e   :  { %2284 = vmatpush3.msra.mxu1 %v107_v17  ;;  %v943_v17 = vld [vmem:[%s3019_s2 + $0x138] sm:$0xff] }
  0x1f   :  { %2285 = vmatprep.subr.mxu1 %v2500_v0 }
  0x20   :  { %2286 = vmatpush3.msra.mxu1 %v106_v18  ;;  %v942_v18 = vld [vmem:[%s3019_s2 + $0x130] sm:$0xff] }
  0x21   :  { %2288 = vmatmul.mubr.f32.vlgmr.msra.gmra.mxu1 %v16_v19  ;;  %2329 = vmatprep.subr.mxu1 %v2500_v0  ;;  %v941_v19 = vld [vmem:[%s3019_s2 + $0x128] sm:$0xff] }
  0x22   :  { %2331 = vmatprep.mubr.msk.f32.mxu1 %vm2501_vm0, %v2500_v0 }
  0xc5   :  { %v89_v20 = vpop.f32.mrf.mxu0 }
  0xc6   :  { %v94_v22 = vrot.slane %v89_v20, 6  ;;  %v96_v23 = vrot.slane %v89_v20, 4  ;;  %v98_v25 = vrot.slane %v89_v20, 2 }
  0xc7   :  { %v2254_v21 = vpop.f32.mrf.mxu0 }
  0xc8   :  { %v101_v24 = vsel %vm100_vm2, %v89_v20, %v94_v22  ;;  %v940_v20 = vld [vmem:[%s3019_s2 + $0x120] sm:$0xff]  ;;  %v939_v21 = vld [vmem:[%s3019_s2 + $0x118] sm:$0xff]  ;;  %v938_v22 = vld [vmem:[%s3019_s2 + $0x110] sm:$0xff] }
  0xc9   :  { %v103_v26 = vsel %vm102_vm3, %v101_v24, %v96_v23  ;;  %v937_v23 = vld [vmem:[%s3019_s2 + $0x108] sm:$0xff]  ;;  %v936_v24 = vld [vmem:[%s3019_s2 + $0x100] sm:$0xff] }
  0xca   :  { %v105_v27 = vsel %vm104_vm4, %v103_v26, %v98_v25  ;;  %v935_v25 = vld [vmem:[%s3019_s2 + $0xf8] sm:$0xff]  ;;  %v934_v26 = vld [vmem:[%s3019_s2 + $0xf0] sm:$0xff] }
  0xe1   :  { %v188_v28 = vpop.f32.mrf.mxu1 }
  0xe2   :  { %v2616_v29 = vadd.f32 %v188_v28, %v105_v27  ;;  %v933_v27 = vld [vmem:[%s3019_s2 + $0xe8] sm:$0xff]  ;;  %v932_v28 = vld [vmem:[%s3019_s2 + $0xe0] sm:$0xff] }
  0xe3   :  { %v2289_v31 = vpop.f32.mrf.mxu1 }
  0xe4   :  { %v266_v32 = vmul.f32 %v2616_v29, %v2616_v29  ;;  %2291 = vmatpush3.msra.mxu0 %v2616_v29 }
  0xe5   :  { %2293 = vmatmul.mubr.msk.f32.vlgmr.msra.gmra.mxu0 %vm19_vm1, %v2621_v30  ;;  %2295 = vmatprep.subr.mxu0 %v2500_v0 }
  0xe6   :  { %2296 = vmatpush3.msra.mxu0 %v266_v32  ;;  %2297 = vmatprep.mubr.msk.f32.mxu0 %vm2501_vm0, %v2500_v0 }
  0xe7   :  { %2300 = vmatprep.subr.mxu0 %v2500_v0 }
  0xe9   :  { %2298 = vmatmul.mubr.msk.f32.vlgmr.msra.gmra.mxu0 %vm19_vm1, %v2621_v30 }
  0xea   :  { %2302 = vmatprep.mubr.msk.f32.mxu0 %vm2501_vm0, %v2500_v0 }
 0x1a5   :  { %v261_v33 = vpop.f32.mrf.mxu0 }
 0x1a6   :  { %v265_v34 = vmul.f32 0.5, %v261_v33  ;;  %v931_v33 = vld [vmem:[%s3019_s2 + $0xd8] sm:$0xff] }
 0x1a7   :  { %v2294_v36 = vpop.f32.mrf.mxu0 }
 0x1a8   :  { %2301 = vmatpush3.msk.msra.mxu0 %vm102_vm3, %v265_v34  ;;  %v338_v38 = vmul.f32 %v265_v34, %v265_v34  ;;  %v930_v34 = vld [vmem:[%s3019_s2 + $0xd0] sm:$0xff] }
 0x1a9   :  { %v333_v37 = vpop.f32.mrf.mxu0  ;;  %2303 = vmatmul.mubr.msk.f32.vlgmr.msra.gmra.mxu0 %vm342_vm5, %v2639_v35  ;;  %2305 = vmatprep.subr.mxu0 %v2500_v0 }
 0x1aa   :  { %v337_v39 = vmul.f32 0.5, %v333_v37  ;;  %2307 = vmatprep.mubr.msk.f32.mxu0 %vm2501_vm0, %v2500_v0  ;;  %v2114_v37 = vld [vmem:[%s3019_s2 + $0x232] ss:$0 sm:$0xff] }
 0x1ab   :  { %v2299_v40 = vpop.f32.mrf.mxu0 }
 0x1ac   :  { %v339_v41 = vsub.f32 %v337_v39, %v338_v38  ;;  %v2115_v39 = vld [vmem:[%s3019_s2 + $0x233] ss:$0 sm:$0xff] }
 0x1ae   :  { %v340_v42 = vadd.f32 1e-05, %v339_v41 }
 0x1b0   :  { %2484 = vrsqrt.f32 %v340_v42  ;;  %v929_v42 = vld [vmem:[%s3019_s2 + $0xc8] sm:$0xff] }
 0x1bd   :  { %v2485_v43 = vpop.eup %2484 }
 0x1be   :  { %2306 = vmatpush3.msk.msra.mxu0 %vm102_vm3, %v2485_v43  ;;  %v2116_v43 = vld [vmem:[%s3019_s2 + $0x241] ss:$0 sm:$0xff] }
 0x1bf   :  { %2308 = vmatmul.mubr.msk.f32.vlgmr.msra.gmra.mxu0 %vm342_vm5, %v2639_v35  ;;  %2310 = vmatprep.subr.mxu0 %v2500_v0 }
 0x1c0   :  { %2326 = vmatprep.mubr.msk.f32.mxu0 %vm2501_vm0, %v2500_v0  ;;  %2311 = vmatpush3.msra.mxu0 %v521_v44 }
 0x1c1   :  { %2312 = vmatprep.subr.mxu0 %v2500_v0 }
 0x1c2   :  { %2313 = vmatpush3.msra.mxu0 %v520_v45 }
 0x1c3   :  { %2314 = vmatprep.subr.mxu0 %v2500_v0 }
 0x1c4   :  { %2315 = vmatpush3.msra.mxu0 %v519_v46 }
 0x1c5   :  { %2316 = vmatprep.subr.mxu0 %v2500_v0 }
 0x1c6   :  { %2317 = vmatpush3.msra.mxu0 %v518_v47 }
 0x1c7   :  { %2318 = vmatprep.subr.mxu0 %v2500_v0 }
 0x1c8   :  { %2319 = vmatpush3.msra.mxu0 %v517_v48 }
 0x1c9   :  { %2320 = vmatprep.subr.mxu0 %v2500_v0 }
 0x1ca   :  { %2321 = vmatpush3.msra.mxu0 %v516_v49 }
 0x1cb   :  { %2322 = vmatprep.subr.mxu0 %v2500_v0 }
 0x1cc   :  { %2323 = vmatpush3.msra.mxu0 %v515_v50 }
 0x1cd   :  { %2324 = vmatprep.subr.mxu0 %v2500_v0 }
 0x1ce   :  { %2325 = vmatpush3.msra.mxu0 %v514_v51 }
 0x1cf   :  { %2334 = vmatprep.subr.mxu0 %v2500_v0 }
 0x269   :  { %v415_v52 = vpop.f32.mrf.mxu0 }
 0x26a   :  { %v419_v54 = vsub.f32 %v2616_v29, %v415_v52 }
 0x26b   :  { %v2304_v53 = vpop.f32.mrf.mxu0 }
 0x27f   :  { %v489_v55 = vpop.f32.mrf.mxu0 }
 0x280   :  { %v493_v57 = vmul.f32 %v489_v55, %v419_v54 }
 0x281   :  { %v2309_v59 = vpop.f32.mrf.mxu0 }
 0x282   :  { %v499_v60 = vmul.f32 %v2104_v56, %v493_v57  ;;  %v1063_v56 = vld [vmem:[%s3019_s2 + $0x160] sm:$0xff]  ;;  %v1062_v57 = vld [vmem:[%s3019_s2 + $0x158] sm:$0xff]  ;;  %v1060_v59 = vld [vmem:[%s3019_s2 + $0x148] sm:$0xff] }
 0x284   :  { %v505_v62 = vadd.f32 %v2105_v58, %v499_v60  ;;  %v1061_v58 = vld [vmem:[%s3019_s2 + $0x150] sm:$0xff] }
 0x286   :  { %v512_v63 = vmul.f32 %v2106_v61, %v505_v62  ;;  %vm506_vm6 = vcmp.ge.f32.partialorder %v505_v62, 0.0 }
 0x288   :  { %v513_v1 = vsel %vm506_vm6, %v505_v62, %v512_v63 }
 0x289   :  { %2327 = vmatmul.mubr.msk.f32.vlgmr.msra.gmra.mxu0 %vm522_vm7, %v513_v1 }
 0x28a   :  { %2336 = vmatprep.mubr.msk.f32.mxu0 %vm2501_vm0, %v2500_v0 }
 0x349   :  { %v2698_v2 = vpop.f32.mrf.mxu0 }
 0x34a   :  { %v667_v3 = vmul.f32 %v2698_v2, %v2698_v2  ;;  %2330 = vmatpush3.msra.mxu1 %v2698_v2 }
 0x34b   :  { %v2328_v4 = vpop.f32.mrf.mxu0  ;;  %2332 = vmatmul.mubr.msk.f32.vlgmr.msra.gmra.mxu1 %vm19_vm1, %v2621_v30  ;;  %2339 = vmatprep.subr.mxu1 %v2500_v0 }
 0x34c   :  { %2335 = vmatpush3.msra.mxu0 %v667_v3  ;;  %2341 = vmatprep.mubr.msk.f32.mxu1 %vm2501_vm0, %v2500_v0 }
 0x34d   :  { %2337 = vmatmul.mubr.msk.f32.vlgmr.msra.gmra.mxu0 %vm19_vm1, %v2621_v30  ;;  %2344 = vmatprep.subr.mxu0 %v2500_v0 }
 0x34e   :  { %2346 = vmatprep.mubr.msk.f32.mxu0 %vm2501_vm0, %v2500_v0 }
 0x40b   :  { %v662_v5 = vpop.f32.mrf.mxu1 }
 0x40c   :  { %v666_v7 = vmul.f32 0.5, %v662_v5 }
 0x40d   :  { %v2333_v8 = vpop.f32.mrf.mxu1  ;;  %v734_v9 = vpop.f32.mrf.mxu0 }
 0x40e   :  { %v739_v10 = vmul.f32 %v666_v7, %v666_v7  ;;  %v738_v11 = vmul.f32 0.5, %v734_v9  ;;  %2340 = vmatpush3.msk.msra.mxu1 %vm102_vm3, %v666_v7 }
 0x40f   :  { %v2338_v12 = vpop.f32.mrf.mxu0  ;;  %2342 = vmatmul.mubr.msk.f32.vlgmr.msra.gmra.mxu1 %vm342_vm5, %v2639_v35  ;;  %2349 = vmatprep.subr.mxu1 %v2500_v0 }
 0x410   :  { %v740_v13 = vsub.f32 %v738_v11, %v739_v10  ;;  %2381 = vmatprep.mubr.msk.f32.mxu1 %vm2501_vm0, %v2500_v0  ;;  %2350 = vmatpush3.msra.mxu1 %v944_v16 }
 0x411   :  { %2351 = vmatprep.subr.mxu1 %v2500_v0 }
 0x412   :  { %v741_v14 = vadd.f32 1e-05, %v740_v13  ;;  %2352 = vmatpush3.msra.mxu1 %v943_v17 }
 0x413   :  { %2353 = vmatprep.subr.mxu1 %v2500_v0 }
 0x414   :  { %2486 = vrsqrt.f32 %v741_v14  ;;  %2354 = vmatpush3.msra.mxu1 %v942_v18 }
 0x415   :  { %2355 = vmatprep.subr.mxu1 %v2500_v0 }
 0x416   :  { %2356 = vmatpush3.msra.mxu1 %v941_v19 }
 0x417   :  { %2357 = vmatprep.subr.mxu1 %v2500_v0 }
 0x418   :  { %2358 = vmatpush3.msra.mxu1 %v940_v20 }
 0x419   :  { %2359 = vmatprep.subr.mxu1 %v2500_v0 }
 0x41a   :  { %2360 = vmatpush3.msra.mxu1 %v939_v21 }
 0x41b   :  { %2361 = vmatprep.subr.mxu1 %v2500_v0 }
 0x41c   :  { %2362 = vmatpush3.msra.mxu1 %v938_v22  ;;  %v2117_v22 = vld [vmem:[%s3019_s2 + $0x234] ss:$0 sm:$0xff] }
 0x41d   :  { %2363 = vmatprep.subr.mxu1 %v2500_v0 }
 0x41e   :  { %2364 = vmatpush3.msra.mxu1 %v937_v23 }
 0x41f   :  { %2365 = vmatprep.subr.mxu1 %v2500_v0 }
 0x420   :  { %2366 = vmatpush3.msra.mxu1 %v936_v24  ;;  %v2118_v24 = vld [vmem:[%s3019_s2 + $0x235] ss:$0 sm:$0xff] }
 0x421   :  { %v2487_v15 = vpop.eup %2486  ;;  %2367 = vmatprep.subr.mxu1 %v2500_v0 }
 0x422   :  { %2345 = vmatpush3.msk.msra.mxu0 %vm102_vm3, %v2487_v15  ;;  %2368 = vmatpush3.msra.mxu1 %v935_v25 }
 0x423   :  { %2347 = vmatmul.mubr.msk.f32.vlgmr.msra.gmra.mxu0 %vm342_vm5, %v2639_v35  ;;  %2384 = vmatprep.subr.mxu0 %v2500_v0 }
 0x424   :  { %2392 = vmatprep.mubr.msk.f32.mxu0 %vm2501_vm0, %v2500_v0  ;;  %2369 = vmatprep.subr.mxu1 %v2500_v0 }
 0x425   :  { %2370 = vmatpush3.msra.mxu1 %v934_v26  ;;  %2385 = vmatpush3.msra.mxu0 %v1063_v56  ;;  %v2119_v26 = vld [vmem:[%s3019_s2 + $0x242] ss:$0 sm:$0xff] }
 0x426   :  { %2371 = vmatprep.subr.mxu1 %v2500_v0  ;;  %2386 = vmatprep.subr.mxu0 %v2500_v0 }
 0x427   :  { %2372 = vmatpush3.msra.mxu1 %v933_v27  ;;  %2387 = vmatpush3.msra.mxu0 %v1062_v57 }
 0x428   :  { %2373 = vmatprep.subr.mxu1 %v2500_v0  ;;  %2388 = vmatprep.subr.mxu0 %v2500_v0 }
 0x429   :  { %2374 = vmatpush3.msra.mxu1 %v932_v28  ;;  %2389 = vmatpush3.msra.mxu0 %v1061_v58  ;;  %v2121_v58 = vld [vmem:[%s3019_s2 + $0x236] ss:$0 sm:$0xff] }
 0x42a   :  { %2375 = vmatprep.subr.mxu1 %v2500_v0  ;;  %2390 = vmatprep.subr.mxu0 %v2500_v0 }
 0x42b   :  { %2376 = vmatpush3.msra.mxu1 %v931_v33  ;;  %2391 = vmatpush3.msra.mxu0 %v1060_v59  ;;  %v1173_v33 = vld [vmem:[%s3019_s2 + $0x168] sm:$0xff] }
 0x42c   :  { %2377 = vmatprep.subr.mxu1 %v2500_v0  ;;  %2395 = vmatprep.subr.mxu0 %v2500_v0 }
 0x42d   :  { %2378 = vmatpush3.msra.mxu1 %v930_v34 }
 0x42e   :  { %2379 = vmatprep.subr.mxu1 %v2500_v0 }
 0x42f   :  { %2380 = vmatpush3.msra.mxu1 %v929_v42 }
 0x430   :  { %2450 = vmatprep.subr.mxu1 %v2500_v0 }
 0x4cf   :  { %v812_v29 = vpop.f32.mrf.mxu1 }
 0x4d0   :  { %v816_v32 = vsub.f32 %v2698_v2, %v812_v29 }
 0x4d1   :  { %v2343_v31 = vpop.f32.mrf.mxu1 }
 0x4d2   :  { %v1175_v31 = vld [vmem:[%s3019_s2 + $0x178] sm:$0xff] }
 0x4e3   :  { %v886_v36 = vpop.f32.mrf.mxu0 }
 0x4e4   :  { %v890_v38 = vmul.f32 %v886_v36, %v816_v32  ;;  %v1174_v32 = vld [vmem:[%s3019_s2 + $0x170] sm:$0xff] }
 0x4e5   :  { %v2348_v40 = vpop.f32.mrf.mxu0 }
 0x4e6   :  { %v896_v41 = vmul.f32 %v2114_v37, %v890_v38 }
 0x4e8   :  { %v902_v44 = vadd.f32 %v2115_v39, %v896_v41 }
 0x4ea   :  { %v909_v45 = vmul.f32 %v2116_v43, %v902_v44  ;;  %vm903_vm8 = vcmp.ge.f32.partialorder %v902_v44, 0.0 }
 0x4ec   :  { %v910_v46 = vsel %vm903_vm8, %v902_v44, %v909_v45 }
 0x4ed   :  { %v920_v47 = vrot.slane %v910_v46, 6  ;;  %v912_v48 = vrot.slane %v910_v46, 2  ;;  %v916_v49 = vrot.slane %v910_v46, 4 }
 0x4ef   :  { %921 = vrot.lane.b32.xlu1 %v920_v47, %s2502_s27  ;;  %913 = vrot.lane.b32.xlu0 %v912_v48, %s2503_s1 }
 0x4f3   :  { %917 = vrot.lane.b32.xlu0 %v916_v49, %s2504_s28 }
 0x561   :  { %v914_v50 = vpop.permute.xlu0 %913  ;;  %v922_v53 = vpop.permute.xlu1 %921 }
 0x562   :  { %v925_v51 = vsel %vm924_vm9, %v910_v46, %v914_v50 }
 0x565   :  { %v918_v52 = vpop.permute.xlu0 %917 }
 0x566   :  { %v926_v54 = vsel %vm522_vm7, %v925_v51, %v918_v52 }
 0x567   :  { %v928_v55 = vsel %vm927_vm10, %v926_v54, %v922_v53 }
 0x568   :  { %2382 = vmatmul.mubr.f32.vlgmr.msra.gmra.mxu1 %v928_v55 }
 0x569   :  { %2452 = vmatprep.mubr.msk.f32.mxu1 %vm2501_vm0, %v2500_v0 }
 0x628   :  { %v1011_v60 = vpop.f32.mrf.mxu1 }
 0x629   :  { %v1016_v61 = vsel %vm1015_vm11, %v1011_v60, 0.0  ;;  %v1025_v62 = vmul.f32 %v1011_v60, %v1011_v60 }
 0x62a   :  { %v1017_v63 = vrot.slane %v1016_v61, 4  ;;  %v2383_v1 = vpop.f32.mrf.mxu1 }
 0x62b   :  { %v1026_v2 = vsel %vm1015_vm11, %v1025_v62, 0.0 }
 0x62c   :  { %v1018_v3 = vadd.f32 %v1017_v63, %v1016_v61  ;;  %v1027_v4 = vrot.slane %v1026_v2, 4 }
 0x62e   :  { %v1019_v5 = vrot.slane %v1018_v3, 2  ;;  %v1028_v7 = vadd.f32 %v1027_v4, %v1026_v2  ;;  %v1366_v2 = vld [vmem:[%s3019_s2 + $0x198] sm:$0xff]  ;;  %v1364_v4 = vld [vmem:[%s3019_s2 + $0x188] sm:$0xff] }
 0x630   :  { %v1020_v8 = vadd.f32 %v1019_v5, %v1018_v3  ;;  %v1029_v9 = vrot.slane %v1028_v7, 2  ;;  %v1365_v3 = vld [vmem:[%s3019_s2 + $0x190] sm:$0xff]  ;;  %v1363_v5 = vld [vmem:[%s3019_s2 + $0x180] sm:$0xff] }
 0x632   :  { %v1021_v10 = vrot.slane %v1020_v8, 1  ;;  %v1030_v11 = vadd.f32 %v1029_v9, %v1028_v7 }
 0x634   :  { %v1022_v12 = vadd.f32 %v1021_v10, %v1020_v8  ;;  %v1031_v13 = vrot.slane %v1030_v11, 1 }
 0x636   :  { %v1024_v14 = vmul.f32 0.5, %v1022_v12  ;;  %v1032_v15 = vadd.f32 %v1031_v13, %v1030_v11 }
 0x638   :  { %v1033_v16 = vmul.f32 0.5, %v1032_v15  ;;  %v1034_v17 = vmul.f32 %v1024_v14, %v1024_v14  ;;  %v1036_v20 = vsub.f32 %v1011_v60, %v1024_v14  ;;  %v2122_v60 = vld [vmem:[%s3019_s2 + $0x237] ss:$0 sm:$0xff] }
 0x63a   :  { %v1035_v18 = vsub.f32 %v1033_v16, %v1034_v17 }
 0x63c   :  { %v1037_v19 = vadd.f32 1e-05, %v1035_v18 }
 0x63e   :  { %2488 = vrsqrt.f32 %v1037_v19 }
 0x64b   :  { %v2489_v21 = vpop.eup %2488 }
 0x64c   :  { %v1039_v23 = vmul.f32 %v2489_v21, %v1036_v20 }
 0x64e   :  { %v1045_v25 = vmul.f32 %v2117_v22, %v1039_v23 }
 0x650   :  { %v1051_v27 = vadd.f32 %v2118_v24, %v1045_v25 }
 0x652   :  { %vm1052_vm12 = vcmp.ge.f32.partialorder %v1051_v27, 0.0  ;;  %v1058_v28 = vmul.f32 %v2119_v26, %v1051_v27 }
 0x654   :  { %v1059_v29 = vsel %vm1052_vm12, %v1051_v27, %v1058_v28 }
 0x655   :  { %2393 = vmatmul.mubr.msk.f32.vlgmr.msra.gmra.mxu0 %vm924_vm9, %v1059_v29 }
 0x656   :  { %2397 = vmatprep.mubr.msk.f32.mxu0 %vm2501_vm0, %v2500_v0  ;;  %2396 = vmatpush3.msra.mxu0 %v1175_v31 }
 0x657   :  { %2400 = vmatprep.subr.mxu0 %v2500_v0 }
 0x659   :  { %2398 = vmatmul.mubr.msk.f32.vlgmr.msra.gmra.mxu0 %vm19_vm1, %v2551_v6 }
 0x65a   :  { %2404 = vmatprep.mubr.msk.f32.mxu0 %vm2501_vm0, %v2500_v0  ;;  %2401 = vmatpush3.msra.mxu0 %v1174_v32 }
 0x65b   :  { %2402 = vmatprep.subr.mxu0 %v2500_v0 }
 0x65c   :  { %2403 = vmatpush3.msra.mxu0 %v1173_v33  ;;  %v2125_v33 = vld [vmem:[%s3019_s2 + $0x238] ss:$0 sm:$0xff] }
 0x65d   :  { %2407 = vmatprep.subr.mxu0 %v2500_v0 }
 0x715   :  { %v1133_v6 = vpop.f32.mrf.mxu0 }
 0x716   :  { %v1138_v34 = vsel %vm1137_vm13, %v1133_v6, 0.0  ;;  %v1146_v36 = vmul.f32 %v1133_v6, %v1133_v6 }
 0x717   :  { %v1139_v37 = vrot.slane %v1138_v34, 4  ;;  %v2394_v38 = vpop.f32.mrf.mxu0 }
 0x718   :  { %v1147_v39 = vsel %vm1137_vm13, %v1146_v36, 0.0 }
 0x719   :  { %v1140_v40 = vadd.f32 %v1139_v37, %v1138_v34  ;;  %v1148_v41 = vrot.slane %v1147_v39, 4  ;;  %v1242_v63 = vpop.f32.mrf.mxu0  ;;  %v2126_v34 = vld [vmem:[%s3019_s2 + $0x239] ss:$0 sm:$0xff]  ;;  %v2127_v37 = vld [vmem:[%s3019_s2 + $0x243] ss:$0 sm:$0xff] }
 0x71b   :  { %v1141_v42 = vrot.slane %v1140_v40, 2  ;;  %v1149_v43 = vadd.f32 %v1148_v41, %v1147_v39  ;;  %v2399_v1 = vpop.f32.mrf.mxu0  ;;  %v1486_v41 = vld [vmem:[%s3019_s2 + $0x1b8] sm:$0xff] }
 0x71d   :  { %v1142_v44 = vadd.f32 %v1141_v42, %v1140_v40  ;;  %v1150_v45 = vrot.slane %v1149_v43, 2  ;;  %v1485_v42 = vld [vmem:[%s3019_s2 + $0x1b0] sm:$0xff] }
 0x71f   :  { %v1143_v46 = vrot.slane %v1142_v44, 1  ;;  %v1151_v47 = vadd.f32 %v1150_v45, %v1149_v43  ;;  %v1484_v43 = vld [vmem:[%s3019_s2 + $0x1a8] sm:$0xff] }
 0x721   :  { %v1144_v48 = vadd.f32 %v1143_v46, %v1142_v44  ;;  %v1152_v49 = vrot.slane %v1151_v47, 1  ;;  %v1483_v44 = vld [vmem:[%s3019_s2 + $0x1a0] sm:$0xff] }
 0x723   :  { %v1145_v50 = vmul.f32 0.5, %v1144_v48  ;;  %v1153_v51 = vadd.f32 %v1152_v49, %v1151_v47 }
 0x725   :  { %v1154_v52 = vmul.f32 0.5, %v1153_v51  ;;  %v1155_v53 = vmul.f32 %v1145_v50, %v1145_v50  ;;  %v1157_v56 = vsub.f32 %v1133_v6, %v1145_v50 }
 0x727   :  { %v1156_v54 = vsub.f32 %v1154_v52, %v1155_v53 }
 0x729   :  { %v1158_v55 = vadd.f32 1e-05, %v1156_v54 }
 0x72b   :  { %2490 = vrsqrt.f32 %v1158_v55 }
 0x738   :  { %v2491_v57 = vpop.eup %2490 }
 0x739   :  { %v1160_v59 = vmul.f32 %v2491_v57, %v1157_v56 }
 0x73b   :  { %v1166_v61 = vmul.f32 %v2121_v58, %v1160_v59 }
 0x73d   :  { %v1172_v62 = vadd.f32 %v2122_v60, %v1166_v61 }
 0x73f   :  { %2405 = vmatmul.mubr.msk.f32.vlgmr.msra.gmra.mxu0 %vm1246_vm14, %v1172_v62 }
 0x740   :  { %2415 = vmatprep.mubr.msk.f32.mxu0 %vm2501_vm0, %v2500_v0  ;;  %2408 = vmatpush3.msra.mxu0 %v1366_v2 }
 0x741   :  { %2409 = vmatprep.subr.mxu0 %v2500_v0 }
 0x742   :  { %2410 = vmatpush3.msra.mxu0 %v1365_v3 }
 0x743   :  { %2411 = vmatprep.subr.mxu0 %v2500_v0 }
 0x744   :  { %2412 = vmatpush3.msra.mxu0 %v1364_v4 }
 0x745   :  { %2413 = vmatprep.subr.mxu0 %v2500_v0 }
 0x746   :  { %2414 = vmatpush3.msra.mxu0 %v1363_v5 }
 0x747   :  { %2418 = vmatprep.subr.mxu0 %v2500_v0 }
 0x7ff   :  { %v1316_v7 = vpop.f32.mrf.mxu0 }
 0x800   :  { %v1317_v8 = vadd.f32 %v1316_v7, %v1242_v63  ;;  %v2129_v7 = vld [vmem:[%s3019_s2 + $0x23a] ss:$0 sm:$0xff] }
 0x801   :  { %v2406_v9 = vpop.f32.mrf.mxu0 }
 0x802   :  { %v1320_v10 = vsel %vm1015_vm11, %v1317_v8, 0.0  ;;  %v1328_v11 = vmul.f32 %v1317_v8, %v1317_v8  ;;  %v2130_v9 = vld [vmem:[%s3019_s2 + $0x23b] ss:$0 sm:$0xff] }
 0x803   :  { %v1321_v12 = vrot.slane %v1320_v10, 4 }
 0x804   :  { %v1329_v13 = vsel %vm1015_vm11, %v1328_v11, 0.0  ;;  %v2131_v11 = vld [vmem:[%s3019_s2 + $0x244] ss:$0 sm:$0xff] }
 0x805   :  { %v1322_v14 = vadd.f32 %v1321_v12, %v1320_v10  ;;  %v1330_v15 = vrot.slane %v1329_v13, 4 }
 0x807   :  { %v1323_v16 = vrot.slane %v1322_v14, 2  ;;  %v1331_v17 = vadd.f32 %v1330_v15, %v1329_v13  ;;  %v1622_v15 = vld [vmem:[%s3019_s2 + $0x1d8] sm:$0xff] }
 0x809   :  { %v1324_v18 = vadd.f32 %v1323_v16, %v1322_v14  ;;  %v1332_v19 = vrot.slane %v1331_v17, 2 }
 0x80b   :  { %v1325_v20 = vrot.slane %v1324_v18, 1  ;;  %v1333_v21 = vadd.f32 %v1332_v19, %v1331_v17 }
 0x80d   :  { %v1326_v22 = vadd.f32 %v1325_v20, %v1324_v18  ;;  %v1334_v23 = vrot.slane %v1333_v21, 1 }
 0x80f   :  { %v1327_v24 = vmul.f32 0.5, %v1326_v22  ;;  %v1335_v25 = vadd.f32 %v1334_v23, %v1333_v21 }
 0x811   :  { %v1336_v26 = vmul.f32 0.5, %v1335_v25  ;;  %v1337_v27 = vmul.f32 %v1327_v24, %v1327_v24  ;;  %v1339_v31 = vsub.f32 %v1317_v8, %v1327_v24 }
 0x813   :  { %v1338_v28 = vsub.f32 %v1336_v26, %v1337_v27 }
 0x815   :  { %v1340_v29 = vadd.f32 1e-05, %v1338_v28 }
 0x817   :  { %2492 = vrsqrt.f32 %v1340_v29 }
 0x824   :  { %v2493_v32 = vpop.eup %2492 }
 0x825   :  { %v1342_v6 = vmul.f32 %v2493_v32, %v1339_v31 }
 0x827   :  { %v1348_v36 = vmul.f32 %v2125_v33, %v1342_v6 }
 0x829   :  { %v1354_v38 = vadd.f32 %v2126_v34, %v1348_v36 }
 0x82b   :  { %vm1355_vm15 = vcmp.ge.f32.partialorder %v1354_v38, 0.0  ;;  %v1361_v39 = vmul.f32 %v2127_v37, %v1354_v38 }
 0x82d   :  { %v1362_v40 = vsel %vm1355_vm15, %v1354_v38, %v1361_v39  ;;  %v1621_v39 = vld [vmem:[%s3019_s2 + $0x1d0] sm:$0xff] }
 0x82e   :  { %2416 = vmatmul.mubr.msk.f32.vlgmr.msra.gmra.mxu0 %vm924_vm9, %v1362_v40 }
 0x82f   :  { %2426 = vmatprep.mubr.msk.f32.mxu0 %vm2501_vm0, %v2500_v0  ;;  %2419 = vmatpush3.msra.mxu0 %v1486_v41  ;;  %v1620_v41 = vld [vmem:[%s3019_s2 + $0x1c8] sm:$0xff] }
 0x830   :  { %2420 = vmatprep.subr.mxu0 %v2500_v0 }
 0x831   :  { %2421 = vmatpush3.msra.mxu0 %v1485_v42 }
 0x832   :  { %2422 = vmatprep.subr.mxu0 %v2500_v0 }
 0x833   :  { %2423 = vmatpush3.msra.mxu0 %v1484_v43  ;;  %v2133_v43 = vld [vmem:[%s3019_s2 + $0x23c] ss:$0 sm:$0xff] }
 0x834   :  { %2424 = vmatprep.subr.mxu0 %v2500_v0 }
 0x835   :  { %2425 = vmatpush3.msra.mxu0 %v1483_v44 }
 0x836   :  { %2429 = vmatprep.subr.mxu0 %v2500_v0 }
 0x8ee   :  { %v1436_v45 = vpop.f32.mrf.mxu0 }
 0x8ef   :  { %v1440_v46 = vsel %vm1015_vm11, %v1436_v45, 0.0  ;;  %v1448_v47 = vmul.f32 %v1436_v45, %v1436_v45 }
 0x8f0   :  { %v1441_v48 = vrot.slane %v1440_v46, 4  ;;  %v2417_v49 = vpop.f32.mrf.mxu0 }
 0x8f1   :  { %v1449_v50 = vsel %vm1015_vm11, %v1448_v47, 0.0 }
 0x8f2   :  { %v1442_v51 = vadd.f32 %v1441_v48, %v1440_v46  ;;  %v1450_v52 = vrot.slane %v1449_v50, 4  ;;  %v1619_v46 = vld [vmem:[%s3019_s2 + $0x1c0] sm:$0xff] }
 0x8f3   :  { %v2135_v48 = vld [vmem:[%s3019_s2 + $0x245] ss:$0 sm:$0xff] }
 0x8f4   :  { %v1443_v53 = vrot.slane %v1442_v51, 2  ;;  %v1451_v54 = vadd.f32 %v1450_v52, %v1449_v50 }
 0x8f6   :  { %v1444_v55 = vadd.f32 %v1443_v53, %v1442_v51  ;;  %v1452_v56 = vrot.slane %v1451_v54, 2 }
 0x8f8   :  { %v1445_v57 = vrot.slane %v1444_v55, 1  ;;  %v1453_v58 = vadd.f32 %v1452_v56, %v1451_v54 }
 0x8fa   :  { %v1446_v59 = vadd.f32 %v1445_v57, %v1444_v55  ;;  %v1454_v60 = vrot.slane %v1453_v58, 1 }
 0x8fc   :  { %v1447_v61 = vmul.f32 0.5, %v1446_v59  ;;  %v1455_v62 = vadd.f32 %v1454_v60, %v1453_v58 }
 0x8fe   :  { %v1456_v63 = vmul.f32 0.5, %v1455_v62  ;;  %v1457_v1 = vmul.f32 %v1447_v61, %v1447_v61  ;;  %v1459_v4 = vsub.f32 %v1436_v45, %v1447_v61  ;;  %v2134_v45 = vld [vmem:[%s3019_s2 + $0x23d] ss:$0 sm:$0xff] }
 0x900   :  { %v1458_v2 = vsub.f32 %v1456_v63, %v1457_v1 }
 0x902   :  { %v1460_v3 = vadd.f32 1e-05, %v1458_v2 }
 0x904   :  { %2494 = vrsqrt.f32 %v1460_v3 }
 0x911   :  { %v2495_v5 = vpop.eup %2494 }
 0x912   :  { %v1462_v8 = vmul.f32 %v2495_v5, %v1459_v4 }
 0x914   :  { %v1468_v10 = vmul.f32 %v2129_v7, %v1462_v8 }
 0x916   :  { %v1474_v12 = vadd.f32 %v2130_v9, %v1468_v10 }
 0x918   :  { %vm1475_vm6 = vcmp.ge.f32.partialorder %v1474_v12, 0.0  ;;  %v1481_v13 = vmul.f32 %v2131_v11, %v1474_v12  ;;  %v2018_v11 = vld [vmem:[%s3019_s2 + $0x218] sm:$0xff] }
 0x91a   :  { %v1482_v14 = vsel %vm1475_vm6, %v1474_v12, %v1481_v13  ;;  %v2017_v12 = vld [vmem:[%s3019_s2 + $0x210] sm:$0xff]  ;;  %v2016_v13 = vld [vmem:[%s3019_s2 + $0x208] sm:$0xff] }
 0x91b   :  { %2427 = vmatmul.mubr.msk.f32.vlgmr.msra.gmra.mxu0 %vm924_vm9, %v1482_v14  ;;  %v2014_v14 = vld [vmem:[%s3019_s2 + $0x1f8] sm:$0xff] }
 0x91c   :  { %2437 = vmatprep.mubr.msk.f32.mxu0 %vm2501_vm0, %v2500_v0  ;;  %2430 = vmatpush3.msra.mxu0 %v1622_v15  ;;  %v2013_v15 = vld [vmem:[%s3019_s2 + $0x1f0] sm:$0xff] }
 0x91d   :  { %2431 = vmatprep.subr.mxu0 %v2500_v0 }
 0x91e   :  { %2432 = vmatpush3.msra.mxu0 %v1621_v39 }
 0x91f   :  { %2433 = vmatprep.subr.mxu0 %v2500_v0 }
 0x920   :  { %2434 = vmatpush3.msra.mxu0 %v1620_v41 }
 0x921   :  { %2435 = vmatprep.subr.mxu0 %v2500_v0 }
 0x922   :  { %2436 = vmatpush3.msra.mxu0 %v1619_v46 }
 0x923   :  { %2440 = vmatprep.subr.mxu0 %v2500_v0 }
 0x9db   :  { %v1556_v16 = vpop.f32.mrf.mxu0 }
 0x9dc   :  { %v1560_v17 = vsel %vm100_vm2, %v1556_v16, 0.0  ;;  %v1568_v18 = vmul.f32 %v1556_v16, %v1556_v16 }
 0x9dd   :  { %v1561_v19 = vrot.slane %v1560_v17, 4  ;;  %v2428_v20 = vpop.f32.mrf.mxu0 }
 0x9de   :  { %v1569_v21 = vsel %vm100_vm2, %v1568_v18, 0.0 }
 0x9df   :  { %v1562_v22 = vadd.f32 %v1561_v19, %v1560_v17  ;;  %v1570_v23 = vrot.slane %v1569_v21, 4  ;;  %v2011_v17 = vld [vmem:[%s3019_s2 + $0x1e0] sm:$0xff] }
 0x9e1   :  { %v1563_v24 = vrot.slane %v1562_v22, 2  ;;  %v1571_v25 = vadd.f32 %v1570_v23, %v1569_v21 }
 0x9e3   :  { %v1564_v26 = vadd.f32 %v1563_v24, %v1562_v22  ;;  %v1572_v27 = vrot.slane %v1571_v25, 2  ;;  %v2143_v22 = vld [vmem:[%s3019_s2 + $0x23e] ss:$0 sm:$0xff]  ;;  %v2144_v24 = vld [vmem:[%s3019_s2 + $0x23f] ss:$0 sm:$0xff] }
 0x9e5   :  { %v1565_v28 = vrot.slane %v1564_v26, 1  ;;  %v1573_v29 = vadd.f32 %v1572_v27, %v1571_v25 }
 0x9e7   :  { %v1566_v31 = vadd.f32 %v1565_v28, %v1564_v26  ;;  %v1574_v32 = vrot.slane %v1573_v29, 1 }
 0x9e9   :  { %v1567_v33 = vmul.f32 0.5, %v1566_v31  ;;  %v1575_v6 = vadd.f32 %v1574_v32, %v1573_v29 }
 0x9eb   :  { %v1576_v34 = vmul.f32 0.5, %v1575_v6  ;;  %v1577_v36 = vmul.f32 %v1567_v33, %v1567_v33  ;;  %v1579_v40 = vsub.f32 %v1556_v16, %v1567_v33  ;;  %v2012_v16 = vld [vmem:[%s3019_s2 + $0x1e8] sm:$0xff] }
 0x9ed   :  { %v1578_v37 = vsub.f32 %v1576_v34, %v1577_v36 }
 0x9ef   :  { %v1580_v38 = vadd.f32 1e-05, %v1578_v37 }
 0x9f1   :  { %2496 = vrsqrt.f32 %v1580_v38 }
 0x9fe   :  { %v2497_v42 = vpop.eup %2496 }
 0x9ff   :  { %v1582_v44 = vmul.f32 %v2497_v42, %v1579_v40 }
 0xa01   :  { %v1588_v47 = vmul.f32 %v2133_v43, %v1582_v44 }
 0xa03   :  { %v1594_v49 = vadd.f32 %v2134_v45, %v1588_v47 }
 0xa05   :  { %vm1595_vm8 = vcmp.ge.f32.partialorder %v1594_v49, 0.0  ;;  %v1601_v50 = vmul.f32 %v2135_v48, %v1594_v49 }
 0xa07   :  { %v1602_v51 = vsel %vm1595_vm8, %v1594_v49, %v1601_v50 }
 0xa08   :  { %v1608_v52 = vrot.slane %v1602_v51, 4  ;;  %v1604_v53 = vrot.slane %v1602_v51, 6  ;;  %v1612_v54 = vrot.slane %v1602_v51, 2 }
 0xa0a   :  { %1609 = vrot.lane.b32.xlu0 %v1608_v52, %s2504_s28  ;;  %1605 = vrot.lane.b32.xlu1 %v1604_v53, %s2502_s27 }
 0xa0e   :  { %1613 = vrot.lane.b32.xlu1 %v1612_v54, %s2503_s1 }
 0xa7c   :  { %v1606_v55 = vpop.permute.xlu1 %1605  ;;  %v1610_v56 = vpop.permute.xlu0 %1609 }
 0xa7d   :  { %v1616_v57 = vsel %vm100_vm2, %v1602_v51, %v1606_v55 }
 0xa7e   :  { %v1617_v58 = vsel %vm102_vm3, %v1616_v57, %v1610_v56 }
 0xa80   :  { %v1614_v59 = vpop.permute.xlu1 %1613 }
 0xa81   :  { %v1618_v60 = vsel %vm104_vm4, %v1617_v58, %v1614_v59 }
 0xa82   :  { %2438 = vmatmul.mubr.msk.f32.vlgmr.msra.gmra.mxu0 %vm924_vm9, %v1618_v60 }
 0xa83   :  { %2442 = vmatprep.mubr.msk.f32.mxu0 %vm2501_vm0, %v2500_v0 }
 0xb42   :  { %v1692_v61 = vpop.f32.mrf.mxu0 }
 0xb43   :  { %v1767_v62 = vmul.f32 %v1692_v61, %v1692_v61  ;;  %2441 = vmatpush3.msra.mxu0 %v1692_v61 }
 0xb44   :  { %v2439_v63 = vpop.f32.mrf.mxu0  ;;  %2443 = vmatmul.mubr.msk.f32.vlgmr.msra.gmra.mxu0 %vm19_vm1, %v2621_v30  ;;  %2445 = vmatprep.subr.mxu0 %v2500_v0 }
 0xb45   :  { %2446 = vmatpush3.msra.mxu0 %v1767_v62  ;;  %2447 = vmatprep.mubr.msk.f32.mxu0 %vm2501_vm0, %v2500_v0 }
 0xb46   :  { %2455 = vmatprep.subr.mxu0 %v2500_v0 }
 0xb48   :  { %2448 = vmatmul.mubr.msk.f32.vlgmr.msra.gmra.mxu0 %vm19_vm1, %v2621_v30 }
 0xb49   :  { %2457 = vmatprep.mubr.msk.f32.mxu0 %vm2501_vm0, %v2500_v0 }
 0xc04   :  { %v1762_v1 = vpop.f32.mrf.mxu0 }
 0xc05   :  { %v1766_v2 = vmul.f32 0.5, %v1762_v1 }
 0xc06   :  { %v2444_v3 = vpop.f32.mrf.mxu0 }
 0xc07   :  { %2451 = vmatpush3.msk.msra.mxu1 %vm102_vm3, %v1766_v2  ;;  %v1839_v5 = vmul.f32 %v1766_v2, %v1766_v2 }
 0xc08   :  { %v1834_v4 = vpop.f32.mrf.mxu0  ;;  %2453 = vmatmul.mubr.msk.f32.vlgmr.msra.gmra.mxu1 %vm342_vm5, %v2639_v35  ;;  %2460 = vmatprep.subr.mxu1 %v2500_v0 }
 0xc09   :  { %v1838_v7 = vmul.f32 0.5, %v1834_v4  ;;  %2476 = vmatprep.mubr.msk.f32.mxu1 %vm2501_vm0, %v2500_v0  ;;  %2461 = vmatpush3.msra.mxu1 %v2018_v11 }
 0xc0a   :  { %v2449_v30 = vpop.f32.mrf.mxu0  ;;  %2462 = vmatprep.subr.mxu1 %v2500_v0 }
 0xc0b   :  { %v1840_v8 = vsub.f32 %v1838_v7, %v1839_v5  ;;  %2463 = vmatpush3.msra.mxu1 %v2017_v12 }
 0xc0c   :  { %2464 = vmatprep.subr.mxu1 %v2500_v0 }
 0xc0d   :  { %v1841_v9 = vadd.f32 1e-05, %v1840_v8  ;;  %2465 = vmatpush3.msra.mxu1 %v2016_v13 }
 0xc0e   :  { %2466 = vmatprep.subr.mxu1 %v2500_v0 }
 0xc0f   :  { %2498 = vrsqrt.f32 %v1841_v9 }
 0xc1c   :  { %v2499_v10 = vpop.eup %2498 }
 0xc1d   :  { %2456 = vmatpush3.msk.msra.mxu0 %vm102_vm3, %v2499_v10 }
 0xc1e   :  { %2458 = vmatmul.mubr.msk.f32.vlgmr.msra.gmra.mxu0 %vm342_vm5, %v2639_v35  ;;  %v2015_v35 = vld [vmem:[%s3019_s2 + $0x200] sm:$0xff] }
 0xc1f   :  { %2467 = vmatpush3.msra.mxu1 %v2015_v35 }
 0xc20   :  { %2468 = vmatprep.subr.mxu1 %v2500_v0 }
 0xc21   :  { %2469 = vmatpush3.msra.mxu1 %v2014_v14 }
 0xc22   :  { %2470 = vmatprep.subr.mxu1 %v2500_v0 }
 0xc23   :  { %2471 = vmatpush3.msra.mxu1 %v2013_v15 }
 0xc24   :  { %2472 = vmatprep.subr.mxu1 %v2500_v0 }
 0xc25   :  { %2473 = vmatpush3.msra.mxu1 %v2012_v16 }
 0xc26   :  { %2474 = vmatprep.subr.mxu1 %v2500_v0  ;;  %v2145_v0 = vld [vmem:[%s3019_s2 + $0x246] ss:$0 sm:$0xff] }
 0xc27   :  { %2475 = vmatpush3.msra.mxu1 %v2011_v17 }
 0xcc8   :  { %v1912_v18 = vpop.f32.mrf.mxu1 }
 0xcc9   :  { %v1916_v20 = vsub.f32 %v1692_v61, %v1912_v18 }
 0xcca   :  { %v2454_v19 = vpop.f32.mrf.mxu1 }
 0xcde   :  { %v1986_v21 = vpop.f32.mrf.mxu0 }
 0xcdf   :  { %v1990_v23 = vmul.f32 %v1986_v21, %v1916_v20 }
 0xce0   :  { %v2459_v25 = vpop.f32.mrf.mxu0 }
 0xce1   :  { %v1996_v26 = vmul.f32 %v2143_v22, %v1990_v23 }
 0xce3   :  { %v2002_v27 = vadd.f32 %v2144_v24, %v1996_v26 }
 0xce5   :  { %v2009_v28 = vmul.f32 %v2145_v0, %v2002_v27  ;;  %vm2003_vm0 = vcmp.ge.f32.partialorder %v2002_v27, 0.0 }
 0xce7   :  { %v2010_v29 = vsel %vm2003_vm0, %v2002_v27, %v2009_v28 }
 0xce8   :  { %2477 = vmatmul.mubr.msk.f32.vlgmr.msra.gmra.mxu1 %vm522_vm7, %v2010_v29 }
 0xda8   :  { %v2088_v31 = vpop.f32.mrf.mxu1 }
 0xda9   :  { %2092 = vst [vmem:[%s3022_s3] sm:$0xff] %v2088_v31 }
 0xdaa   :  { %v2478_v32 = vpop.f32.mrf.mxu1 }

</bundles_post_ra>
